<compile_context>
chip_gen: v7x
topology: tpu7x:2x2x1
jax: 0.10.0
libtpu: 0.0.40
codegen_flags: <defaults>
</compile_context>

<pallas_src>
import functools

import jax
import jax.numpy as jnp
from jax.experimental import pallas as pl
from jax.experimental.pallas import tpu as pltpu

NEG_SLOPE = 0.01  # F.leaky_relu_ default; AttentiveFP passes 0.01 to GATConv too.


# -----------------------------------------------------------------------------------
# Fused kernel: whole AttentiveFP forward, single invocation, everything in VMEM.
# -----------------------------------------------------------------------------------
def _fused_attentive_fp_kernel(*refs, num_atom_layers, num_timesteps, hidden):
    H = hidden
    o_ref = refs[-1]
    it = iter(refs[:-1])

    def nxt():
        return next(it)[...]

    # ---- graph tensors ----
    x0 = nxt()        # [N, Cin]
    ea = nxt()        # [E, De]
    src_oh = nxt()    # [E, N]
    tgt_oh = nxt()    # [E, N]
    tgt_ohT = nxt()   # [N, E]
    bat_oh = nxt()    # [N, B]
    bat_ohT = nxt()   # [B, N]
    # ---- weights ----
    lin1_w, lin1_b = nxt(), nxt()
    g_att_l, g_att_r = nxt(), nxt()                     # [H,1] each
    g_w_x, g_w_e, g_lin2, g_bias = nxt(), nxt(), nxt(), nxt()
    gru0_w, gru0_b = nxt(), nxt()
    atom = []
    for _ in range(num_atom_layers):
        atom.append((nxt(), nxt(), nxt(), nxt(), nxt()))  # lin, att[H,2], bias, gru_w, gru_b
    m_lin, m_att, m_bias, m_gru_w, m_gru_b = nxt(), nxt(), nxt(), nxt(), nxt()
    lin2_w, lin2_b = nxt(), nxt()

    def mm(a, b):
        return jnp.dot(a, b, preferred_element_type=jnp.float32)

    def leaky(v):
        return jnp.where(v > 0, v, NEG_SLOPE * v)

    def elu(v):
        # exp only on the clamped negative branch -> no overflow in the dead lane
        return jnp.where(v > 0, v, jnp.exp(jnp.minimum(v, 0.0)) - 1.0)

    def seg_softmax(score, seg_oh, seg_ohT):
        # score [E,1]; seg_oh [E,S] one-hot segment id; seg_ohT [S,E]
        masked = jnp.where(seg_oh > 0, score, jnp.float32(-1e30))   # [E,S]
        m = jnp.max(masked, axis=0, keepdims=True)                  # [1,S] per-seg max
        m_e = jnp.sum(seg_oh * m, axis=1, keepdims=True)            # [E,1] gather back
        e = jnp.exp(score - m_e)                                    # [E,1]
        denom = mm(seg_oh, mm(seg_ohT, e))                          # seg-sum -> [E,1]
        return e / (denom + 1e-16)

    def gru(inp, hprev, w, b):
        # packed weight [2H, 4H]: gate column blocks [r | z | i_n | h_n]
        g = mm(inp, w[:H, :]) + mm(hprev, w[H:, :]) + b             # [*, 4H] lane-dense
        r = jax.nn.sigmoid(g[:, 0:H])
        z = jax.nn.sigmoid(g[:, H:2 * H])
        n = jnp.tanh(g[:, 2 * H:3 * H] + r * g[:, 3 * H:4 * H])
        return jnp.maximum((1.0 - z) * n + z * hprev, 0.0)          # .relu_() after GRU

    # ---------------- x = leaky_relu(lin1(x)) ----------------
    x = leaky(mm(x0, lin1_w) + lin1_b)                              # [N,H]

    # ---------------- GATEConv + ELU + GRU ----------------
    x_src = mm(src_oh, x)                                           # x[src]        [E,H]
    alpha_i = mm(tgt_oh, mm(x, g_att_r))                            # x_i . att_r   [E,1]
    x_j = leaky(mm(x_src, g_w_x) + mm(ea, g_w_e))                   # lin1([x_j|e]) [E,H]
    alpha_j = mm(x_j, g_att_l)                                      # [E,1]
    alpha = seg_softmax(leaky(alpha_j + alpha_i), tgt_oh, tgt_ohT)
    msg = mm(x_src, g_lin2) * alpha                                 # lin2(x_j)*a   [E,H]
    h = elu(mm(tgt_ohT, msg) + g_bias)                              # scatter-add   [N,H]
    x = gru(h, x, gru0_w, gru0_b)

    # ---------------- atom-level GATConv + GRU layers ----------------
    for (c_lin, c_att, c_bias, c_gru_w, c_gru_b) in atom:
        x_lin = mm(x, c_lin)                                        # [N,H]
        a = mm(x_lin, c_att)                                        # [N,2]: [src|dst]
        score = leaky(mm(src_oh, a[:, 0:1]) + mm(tgt_oh, a[:, 1:2]))  # [E,1]
        alpha = seg_softmax(score, tgt_oh, tgt_ohT)
        h = elu(mm(tgt_ohT, mm(src_oh, x_lin) * alpha) + c_bias)    # [N,H]
        x = gru(h, x, c_gru_w, c_gru_b)

    # ---------------- molecule-level readout ----------------
    out = jnp.maximum(mm(bat_ohT, x), 0.0)                          # add_pool+relu [B,H]
    # loop-invariant (independent of `out`) -> hoisted out of the timestep loop
    x_lin = mm(x, m_lin)                                            # [N,H]
    a_s = mm(x_lin, m_att[:, 0:1])                                  # [N,1]
    for _ in range(num_timesteps):
        a_d = mm(mm(out, m_lin), m_att[:, 1:2])                     # [B,1]
        score = leaky(a_s + mm(bat_oh, a_d))                        # [N,1]
        alpha = seg_softmax(score, bat_oh, bat_ohT)                 # softmax per mol
        h = elu(mm(bat_ohT, x_lin * alpha) + m_bias)                # [B,H]
        out = gru(h, out, m_gru_w, m_gru_b)

    o_ref[...] = mm(out, lin2_w) + lin2_b                           # [B, Cout]


# -----------------------------------------------------------------------------------
# Host-side weight packing / wrapper
# -----------------------------------------------------------------------------------
def _pack_gru(g, h_dim):
    """Pack torch-layout GRUCell params into one [2H, 4H] weight + [1, 4H] bias.

    Gate column blocks are [r | z | i_n | h_n], so with
        g = x @ W[:H] + h @ W[H:] + b
    we recover exactly torch.nn.GRUCell's r / z / n equations.
    """
    H = h_dim
    wt_i = g["w_ih"].T.astype(jnp.float32)   # [H, 3H]
    wt_h = g["w_hh"].T.astype(jnp.float32)   # [H, 3H]
    w = jnp.zeros((2 * H, 4 * H), jnp.float32)
    w = w.at[:H, 0:3 * H].set(wt_i)                       # i_r, i_z, i_n
    w = w.at[H:, 0:2 * H].set(wt_h[:, 0:2 * H])           # h_r, h_z
    w = w.at[H:, 3 * H:4 * H].set(wt_h[:, 2 * H:3 * H])   # h_n
    b = jnp.concatenate([
        g["b_ih"][0:2 * H] + g["b_hh"][0:2 * H],          # r, z biases combined
        g["b_ih"][2 * H:3 * H],                           # b_in
        g["b_hh"][2 * H:3 * H],                           # b_hn
    ]).astype(jnp.float32).reshape(1, 4 * H)
    return w, b


def attentive_fp_forward(params, x, src_oh, tgt_oh, edge_attr, batch_oh, num_timesteps):
    B = batch_oh.shape[1]
    H = params["lin1_w"].shape[0]
    Cout = params["lin2_w"].shape[0]
    num_atom_layers = len(params["atom_convs"])
    f32 = lambda a: jnp.asarray(a, jnp.float32)

    gate = params["gate"]
    inputs = [
        f32(x), f32(edge_attr), f32(src_oh), f32(tgt_oh), f32(tgt_oh).T,
        f32(batch_oh), f32(batch_oh).T,
        f32(params["lin1_w"]).T, f32(params["lin1_b"]).reshape(1, H),
        f32(gate["att_l"]).T, f32(gate["att_r"]).T,                   # [H,1] columns
        f32(gate["lin1_w"][:, :H]).T, f32(gate["lin1_w"][:, H:]).T,   # split cat-weight
        f32(gate["lin2_w"]).T, f32(gate["bias"]).reshape(1, H),
        *_pack_gru(params["gru"], H),
    ]
    for conv, gru_p in zip(params["atom_convs"], params["atom_grus"]):
        att = jnp.concatenate([f32(conv["att_src"]).T, f32(conv["att_dst"]).T], axis=1)
        inputs += [f32(conv["lin_w"]).T, att, f32(conv["bias"]).reshape(1, H),
                   *_pack_gru(gru_p, H)]
    mc = params["mol_conv"]
    m_att = jnp.concatenate([f32(mc["att_src"]).T, f32(mc["att_dst"]).T], axis=1)
    inputs += [f32(mc["lin_w"]).T, m_att, f32(mc["bias"]).reshape(1, H),
               *_pack_gru(params["mol_gru"], H)]
    inputs += [f32(params["lin2_w"]).T, f32(params["lin2_b"]).reshape(1, Cout)]

    kernel = functools.partial(_fused_attentive_fp_kernel,
                               num_atom_layers=num_atom_layers,
                               num_timesteps=num_timesteps, hidden=H)
    vmem = pl.BlockSpec(memory_space=pltpu.MemorySpace.VMEM)   # whole array in VMEM
    return pl.pallas_call(
        kernel,
        in_specs=[vmem] * len(inputs),
        out_specs=vmem,
        out_shape=jax.ShapeDtypeStruct((B, Cout), jnp.float32),
    )(*inputs)


# -----------------------------------------------------------------------------------
# Parameter init (same structure as the torch module)
# -----------------------------------------------------------------------------------
def init_params(key, in_ch, hid, out_ch, edge_dim, num_layers):
    keys = iter(jax.random.split(key, 128))

    def rnd(shape, scale=0.1):
        return scale * jax.random.normal(next(keys), shape, jnp.float32)

    def gru_params(in_dim, h_dim):
        return dict(w_ih=rnd((3 * h_dim, in_dim)), w_hh=rnd((3 * h_dim, h_dim)),
                    b_ih=rnd((3 * h_dim,)), b_hh=rnd((3 * h_dim,)))

    def gat_params(h_dim):
        return dict(lin_w=rnd((h_dim, h_dim)), att_src=rnd((1, h_dim)),
                    att_dst=rnd((1, h_dim)), bias=jnp.zeros((h_dim,), jnp.float32))

    return dict(
        lin1_w=rnd((hid, in_ch)), lin1_b=rnd((hid,)),
        gate=dict(att_l=rnd((1, hid)), att_r=rnd((1, hid)),
                  lin1_w=rnd((hid, hid + edge_dim)), lin2_w=rnd((hid, hid)),
                  bias=jnp.zeros((hid,), jnp.float32)),
        gru=gru_params(hid, hid),
        atom_convs=[gat_params(hid) for _ in range(num_layers - 1)],
        atom_grus=[gru_params(hid, hid) for _ in range(num_layers - 1)],
        mol_conv=gat_params(hid),
        mol_gru=gru_params(hid, hid),
        lin2_w=rnd((out_ch, hid)), lin2_b=rnd((out_ch,)),
    )


# -----------------------------------------------------------------------------------
if __name__ == "__main__":
    in_channels, hidden_channels, out_channels = 16, 32, 8
    edge_dim, num_layers, num_timesteps = 8, 2, 2
    N, E, B = 16, 32, 2

    key = jax.random.PRNGKey(0)
    k_par, k_x, k_e, k_s0, k_t0, k_s1, k_t1 = jax.random.split(key, 7)

    params = init_params(k_par, in_channels, hidden_channels, out_channels,
                         edge_dim, num_layers)

    x = jax.random.normal(k_x, (N, in_channels), jnp.float32)
    edge_attr = jax.random.normal(k_e, (E, edge_dim), jnp.float32)

    # two graphs of 8 nodes each; 16 intra-graph edges per graph
    batch = jnp.concatenate([jnp.zeros((8,), jnp.int32), jnp.ones((8,), jnp.int32)])
    src = jnp.concatenate([jax.random.randint(k_s0, (16,), 0, 8),
                           jax.random.randint(k_s1, (16,), 8, 16)])
    tgt = jnp.concatenate([jax.random.randint(k_t0, (16,), 0, 8),
                           jax.random.randint(k_t1, (16,), 8, 16)])

    src_oh = jax.nn.one_hot(src, N, dtype=jnp.float32)       # [E, N]
    tgt_oh = jax.nn.one_hot(tgt, N, dtype=jnp.float32)       # [E, N]
    batch_oh = jax.nn.one_hot(batch, B, dtype=jnp.float32)   # [N, B]

    fwd = jax.jit(attentive_fp_forward, static_argnames=("num_timesteps",))
    out = fwd(params, x, src_oh, tgt_oh, edge_attr, batch_oh,
              num_timesteps=num_timesteps)
    out = jax.block_until_ready(out)
    assert out.shape == (B, out_channels)
    assert bool(jnp.all(jnp.isfinite(out)))
    print("KERNEL_OK")
</pallas_src>

<mosaic_0001>
module attributes {stable_mosaic.version = 11 : i64} {
  func.func @_fused_attentive_fp_kernel(%arg0: memref<16x16xf32, #tpu.memory_space<vmem>>, %arg1: memref<32x8xf32, #tpu.memory_space<vmem>>, %arg2: memref<32x16xf32, #tpu.memory_space<vmem>>, %arg3: memref<32x16xf32, #tpu.memory_space<vmem>>, %arg4: memref<16x32xf32, #tpu.memory_space<vmem>>, %arg5: memref<16x2xf32, #tpu.memory_space<vmem>>, %arg6: memref<2x16xf32, #tpu.memory_space<vmem>>, %arg7: memref<16x32xf32, #tpu.memory_space<vmem>>, %arg8: memref<1x32xf32, #tpu.memory_space<vmem>>, %arg9: memref<32x1xf32, #tpu.memory_space<vmem>>, %arg10: memref<32x1xf32, #tpu.memory_space<vmem>>, %arg11: memref<32x32xf32, #tpu.memory_space<vmem>>, %arg12: memref<8x32xf32, #tpu.memory_space<vmem>>, %arg13: memref<32x32xf32, #tpu.memory_space<vmem>>, %arg14: memref<1x32xf32, #tpu.memory_space<vmem>>, %arg15: memref<64x128xf32, #tpu.memory_space<vmem>>, %arg16: memref<1x128xf32, #tpu.memory_space<vmem>>, %arg17: memref<32x32xf32, #tpu.memory_space<vmem>>, %arg18: memref<32x2xf32, #tpu.memory_space<vmem>>, %arg19: memref<1x32xf32, #tpu.memory_space<vmem>>, %arg20: memref<64x128xf32, #tpu.memory_space<vmem>>, %arg21: memref<1x128xf32, #tpu.memory_space<vmem>>, %arg22: memref<32x32xf32, #tpu.memory_space<vmem>>, %arg23: memref<32x2xf32, #tpu.memory_space<vmem>>, %arg24: memref<1x32xf32, #tpu.memory_space<vmem>>, %arg25: memref<64x128xf32, #tpu.memory_space<vmem>>, %arg26: memref<1x128xf32, #tpu.memory_space<vmem>>, %arg27: memref<32x8xf32, #tpu.memory_space<vmem>>, %arg28: memref<1x8xf32, #tpu.memory_space<vmem>>, %arg29: memref<2x8xf32, #tpu.memory_space<vmem>>) attributes {dimension_semantics = [], scalar_prefetch = 0 : i64, scratch_operands = 0 : i64, tpu.core_type = #tpu.core_type<tc>} {
    %c0 = arith.constant 0 : index
    %c0_0 = arith.constant 0 : index
    %0 = vector.load %arg0[%c0, %c0_0] : memref<16x16xf32, #tpu.memory_space<vmem>>, vector<16x16xf32>
    %c0_1 = arith.constant 0 : index
    %c0_2 = arith.constant 0 : index
    %1 = vector.load %arg1[%c0_1, %c0_2] : memref<32x8xf32, #tpu.memory_space<vmem>>, vector<32x8xf32>
    %c0_3 = arith.constant 0 : index
    %c0_4 = arith.constant 0 : index
    %2 = vector.load %arg2[%c0_3, %c0_4] : memref<32x16xf32, #tpu.memory_space<vmem>>, vector<32x16xf32>
    %c0_5 = arith.constant 0 : index
    %c0_6 = arith.constant 0 : index
    %3 = vector.load %arg3[%c0_5, %c0_6] : memref<32x16xf32, #tpu.memory_space<vmem>>, vector<32x16xf32>
    %c0_7 = arith.constant 0 : index
    %c0_8 = arith.constant 0 : index
    %4 = vector.load %arg4[%c0_7, %c0_8] : memref<16x32xf32, #tpu.memory_space<vmem>>, vector<16x32xf32>
    %c0_9 = arith.constant 0 : index
    %c0_10 = arith.constant 0 : index
    %5 = vector.load %arg5[%c0_9, %c0_10] : memref<16x2xf32, #tpu.memory_space<vmem>>, vector<16x2xf32>
    %c0_11 = arith.constant 0 : index
    %c0_12 = arith.constant 0 : index
    %6 = vector.load %arg6[%c0_11, %c0_12] : memref<2x16xf32, #tpu.memory_space<vmem>>, vector<2x16xf32>
    %c0_13 = arith.constant 0 : index
    %c0_14 = arith.constant 0 : index
    %7 = vector.load %arg7[%c0_13, %c0_14] : memref<16x32xf32, #tpu.memory_space<vmem>>, vector<16x32xf32>
    %c0_15 = arith.constant 0 : index
    %c0_16 = arith.constant 0 : index
    %8 = vector.load %arg8[%c0_15, %c0_16] : memref<1x32xf32, #tpu.memory_space<vmem>>, vector<1x32xf32>
    %c0_17 = arith.constant 0 : index
    %c0_18 = arith.constant 0 : index
    %9 = vector.load %arg9[%c0_17, %c0_18] : memref<32x1xf32, #tpu.memory_space<vmem>>, vector<32x1xf32>
    %c0_19 = arith.constant 0 : index
    %c0_20 = arith.constant 0 : index
    %10 = vector.load %arg10[%c0_19, %c0_20] : memref<32x1xf32, #tpu.memory_space<vmem>>, vector<32x1xf32>
    %c0_21 = arith.constant 0 : index
    %c0_22 = arith.constant 0 : index
    %11 = vector.load %arg11[%c0_21, %c0_22] : memref<32x32xf32, #tpu.memory_space<vmem>>, vector<32x32xf32>
    %c0_23 = arith.constant 0 : index
    %c0_24 = arith.constant 0 : index
    %12 = vector.load %arg12[%c0_23, %c0_24] : memref<8x32xf32, #tpu.memory_space<vmem>>, vector<8x32xf32>
    %c0_25 = arith.constant 0 : index
    %c0_26 = arith.constant 0 : index
    %13 = vector.load %arg13[%c0_25, %c0_26] : memref<32x32xf32, #tpu.memory_space<vmem>>, vector<32x32xf32>
    %c0_27 = arith.constant 0 : index
    %c0_28 = arith.constant 0 : index
    %14 = vector.load %arg14[%c0_27, %c0_28] : memref<1x32xf32, #tpu.memory_space<vmem>>, vector<1x32xf32>
    %c0_29 = arith.constant 0 : index
    %c0_30 = arith.constant 0 : index
    %15 = vector.load %arg15[%c0_29, %c0_30] : memref<64x128xf32, #tpu.memory_space<vmem>>, vector<64x128xf32>
    %c0_31 = arith.constant 0 : index
    %c0_32 = arith.constant 0 : index
    %16 = vector.load %arg16[%c0_31, %c0_32] : memref<1x128xf32, #tpu.memory_space<vmem>>, vector<1x128xf32>
    %c0_33 = arith.constant 0 : index
    %c0_34 = arith.constant 0 : index
    %17 = vector.load %arg17[%c0_33, %c0_34] : memref<32x32xf32, #tpu.memory_space<vmem>>, vector<32x32xf32>
    %c0_35 = arith.constant 0 : index
    %c0_36 = arith.constant 0 : index
    %18 = vector.load %arg18[%c0_35, %c0_36] : memref<32x2xf32, #tpu.memory_space<vmem>>, vector<32x2xf32>
    %c0_37 = arith.constant 0 : index
    %c0_38 = arith.constant 0 : index
    %19 = vector.load %arg19[%c0_37, %c0_38] : memref<1x32xf32, #tpu.memory_space<vmem>>, vector<1x32xf32>
    %c0_39 = arith.constant 0 : index
    %c0_40 = arith.constant 0 : index
    %20 = vector.load %arg20[%c0_39, %c0_40] : memref<64x128xf32, #tpu.memory_space<vmem>>, vector<64x128xf32>
    %c0_41 = arith.constant 0 : index
    %c0_42 = arith.constant 0 : index
    %21 = vector.load %arg21[%c0_41, %c0_42] : memref<1x128xf32, #tpu.memory_space<vmem>>, vector<1x128xf32>
    %c0_43 = arith.constant 0 : index
    %c0_44 = arith.constant 0 : index
    %22 = vector.load %arg22[%c0_43, %c0_44] : memref<32x32xf32, #tpu.memory_space<vmem>>, vector<32x32xf32>
    %c0_45 = arith.constant 0 : index
    %c0_46 = arith.constant 0 : index
    %23 = vector.load %arg23[%c0_45, %c0_46] : memref<32x2xf32, #tpu.memory_space<vmem>>, vector<32x2xf32>
    %c0_47 = arith.constant 0 : index
    %c0_48 = arith.constant 0 : index
    %24 = vector.load %arg24[%c0_47, %c0_48] : memref<1x32xf32, #tpu.memory_space<vmem>>, vector<1x32xf32>
    %c0_49 = arith.constant 0 : index
    %c0_50 = arith.constant 0 : index
    %25 = vector.load %arg25[%c0_49, %c0_50] : memref<64x128xf32, #tpu.memory_space<vmem>>, vector<64x128xf32>
    %c0_51 = arith.constant 0 : index
    %c0_52 = arith.constant 0 : index
    %26 = vector.load %arg26[%c0_51, %c0_52] : memref<1x128xf32, #tpu.memory_space<vmem>>, vector<1x128xf32>
    %c0_53 = arith.constant 0 : index
    %c0_54 = arith.constant 0 : index
    %27 = vector.load %arg27[%c0_53, %c0_54] : memref<32x8xf32, #tpu.memory_space<vmem>>, vector<32x8xf32>
    %c0_55 = arith.constant 0 : index
    %c0_56 = arith.constant 0 : index
    %28 = vector.load %arg28[%c0_55, %c0_56] : memref<1x8xf32, #tpu.memory_space<vmem>>, vector<1x8xf32>
    %cst = arith.constant dense<0.000000e+00> : vector<16x32xf32>
    %29 = tpu.matmul %0, %7, %cst {dimension_numbers = #tpu.dot_dimension_numbers<[1], [0], [0], [1], [0, 0, 1, 1], [], []>} : vector<16x16xf32>, vector<16x32xf32>, vector<16x32xf32> -> vector<16x32xf32>
    %30 = vector.broadcast %8 : vector<1x32xf32> to vector<16x32xf32>
    %31 = arith.addf %29, %30 : vector<16x32xf32>
    %cst_57 = arith.constant 0.000000e+00 : f32
    %32 = vector.broadcast %cst_57 : f32 to vector<16x32xf32>
    %33 = arith.cmpf ogt, %31, %32 : vector<16x32xf32>
    %cst_58 = arith.constant 0.00999999977 : f32
    %34 = vector.broadcast %cst_58 : f32 to vector<16x32xf32>
    %35 = arith.mulf %34, %31 : vector<16x32xf32>
    %36 = arith.select %33, %31, %35 : vector<16x32xi1>, vector<16x32xf32>
    %cst_59 = arith.constant dense<0.000000e+00> : vector<32x32xf32>
    %37 = tpu.matmul %2, %36, %cst_59 {dimension_numbers = #tpu.dot_dimension_numbers<[1], [0], [0], [1], [0, 0, 1, 1], [], []>} : vector<32x16xf32>, vector<16x32xf32>, vector<32x32xf32> -> vector<32x32xf32>
    %cst_60 = arith.constant dense<0.000000e+00> : vector<16x1xf32>
    %38 = tpu.matmul %36, %10, %cst_60 {dimension_numbers = #tpu.dot_dimension_numbers<[1], [0], [0], [1], [0, 0, 1, 1], [], []>} : vector<16x32xf32>, vector<32x1xf32>, vector<16x1xf32> -> vector<16x1xf32>
    %cst_61 = arith.constant dense<0.000000e+00> : vector<32x1xf32>
    %39 = tpu.matmul %3, %38, %cst_61 {dimension_numbers = #tpu.dot_dimension_numbers<[1], [0], [0], [1], [0, 0, 1, 1], [], []>} : vector<32x16xf32>, vector<16x1xf32>, vector<32x1xf32> -> vector<32x1xf32>
    %cst_62 = arith.constant dense<0.000000e+00> : vector<32x32xf32>
    %40 = tpu.matmul %37, %11, %cst_62 {dimension_numbers = #tpu.dot_dimension_numbers<[1], [0], [0], [1], [0, 0, 1, 1], [], []>} : vector<32x32xf32>, vector<32x32xf32>, vector<32x32xf32> -> vector<32x32xf32>
    %cst_63 = arith.constant dense<0.000000e+00> : vector<32x32xf32>
    %41 = tpu.matmul %1, %12, %cst_63 {dimension_numbers = #tpu.dot_dimension_numbers<[1], [0], [0], [1], [0, 0, 1, 1], [], []>} : vector<32x8xf32>, vector<8x32xf32>, vector<32x32xf32> -> vector<32x32xf32>
    %42 = arith.addf %40, %41 : vector<32x32xf32>
    %cst_64 = arith.constant 0.000000e+00 : f32
    %43 = vector.broadcast %cst_64 : f32 to vector<32x32xf32>
    %44 = arith.cmpf ogt, %42, %43 : vector<32x32xf32>
    %cst_65 = arith.constant 0.00999999977 : f32
    %45 = vector.broadcast %cst_65 : f32 to vector<32x32xf32>
    %46 = arith.mulf %45, %42 : vector<32x32xf32>
    %47 = arith.select %44, %42, %46 : vector<32x32xi1>, vector<32x32xf32>
    %cst_66 = arith.constant dense<0.000000e+00> : vector<32x1xf32>
    %48 = tpu.matmul %47, %9, %cst_66 {dimension_numbers = #tpu.dot_dimension_numbers<[1], [0], [0], [1], [0, 0, 1, 1], [], []>} : vector<32x32xf32>, vector<32x1xf32>, vector<32x1xf32> -> vector<32x1xf32>
    %49 = arith.addf %48, %39 : vector<32x1xf32>
    %cst_67 = arith.constant 0.000000e+00 : f32
    %50 = vector.broadcast %cst_67 : f32 to vector<32x1xf32>
    %51 = arith.cmpf ogt, %49, %50 : vector<32x1xf32>
    %cst_68 = arith.constant 0.00999999977 : f32
    %52 = vector.broadcast %cst_68 : f32 to vector<32x1xf32>
    %53 = arith.mulf %52, %49 : vector<32x1xf32>
    %54 = arith.select %51, %49, %53 : vector<32x1xi1>, vector<32x1xf32>
    %cst_69 = arith.constant 0.000000e+00 : f32
    %55 = vector.broadcast %cst_69 : f32 to vector<32x16xf32>
    %56 = arith.cmpf ogt, %3, %55 : vector<32x16xf32>
    %cst_70 = arith.constant -1.000000e+30 : f32
    %57 = vector.shape_cast %54 : vector<32x1xf32> to vector<32x1xf32>
    %58 = vector.broadcast %57 : vector<32x1xf32> to vector<32x16xf32>
    %59 = vector.broadcast %cst_70 : f32 to vector<32x16xf32>
    %60 = arith.select %56, %58, %59 : vector<32x16xi1>, vector<32x16xf32>
    %cst_71 = arith.constant dense<0xFF800000> : vector<16xf32>
    %61 = vector.multi_reduction <maximumf>, %60, %cst_71 [0] : vector<32x16xf32> to vector<16xf32>
    %62 = vector.shape_cast %61 : vector<16xf32> to vector<1x16xf32>
    %63 = vector.broadcast %62 : vector<1x16xf32> to vector<32x16xf32>
    %64 = arith.mulf %3, %63 : vector<32x16xf32>
    %cst_72 = arith.constant dense<0.000000e+00> : vector<32xf32>
    %65 = vector.multi_reduction <add>, %64, %cst_72 [1] : vector<32x16xf32> to vector<32xf32>
    %66 = vector.shape_cast %65 : vector<32xf32> to vector<32x1xf32>
    %67 = arith.subf %54, %66 : vector<32x1xf32>
    %68 = math.exp %67 : vector<32x1xf32>
    %cst_73 = arith.constant dense<0.000000e+00> : vector<16x1xf32>
    %69 = tpu.matmul %4, %68, %cst_73 {dimension_numbers = #tpu.dot_dimension_numbers<[1], [0], [0], [1], [0, 0, 1, 1], [], []>} : vector<16x32xf32>, vector<32x1xf32>, vector<16x1xf32> -> vector<16x1xf32>
    %cst_74 = arith.constant dense<0.000000e+00> : vector<32x1xf32>
    %70 = tpu.matmul %3, %69, %cst_74 {dimension_numbers = #tpu.dot_dimension_numbers<[1], [0], [0], [1], [0, 0, 1, 1], [], []>} : vector<32x16xf32>, vector<16x1xf32>, vector<32x1xf32> -> vector<32x1xf32>
    %cst_75 = arith.constant 1.000000e-16 : f32
    %71 = vector.broadcast %cst_75 : f32 to vector<32x1xf32>
    %72 = arith.addf %70, %71 : vector<32x1xf32>
    %73 = arith.divf %68, %72 : vector<32x1xf32>
    %cst_76 = arith.constant dense<0.000000e+00> : vector<32x32xf32>
    %74 = tpu.matmul %37, %13, %cst_76 {dimension_numbers = #tpu.dot_dimension_numbers<[1], [0], [0], [1], [0, 0, 1, 1], [], []>} : vector<32x32xf32>, vector<32x32xf32>, vector<32x32xf32> -> vector<32x32xf32>
    %75 = vector.broadcast %73 : vector<32x1xf32> to vector<32x32xf32>
    %76 = arith.mulf %74, %75 : vector<32x32xf32>
    %cst_77 = arith.constant dense<0.000000e+00> : vector<16x32xf32>
    %77 = tpu.matmul %4, %76, %cst_77 {dimension_numbers = #tpu.dot_dimension_numbers<[1], [0], [0], [1], [0, 0, 1, 1], [], []>} : vector<16x32xf32>, vector<32x32xf32>, vector<16x32xf32> -> vector<16x32xf32>
    %78 = vector.broadcast %14 : vector<1x32xf32> to vector<16x32xf32>
    %79 = arith.addf %77, %78 : vector<16x32xf32>
    %cst_78 = arith.constant 0.000000e+00 : f32
    %80 = vector.broadcast %cst_78 : f32 to vector<16x32xf32>
    %81 = arith.cmpf ogt, %79, %80 : vector<16x32xf32>
    %cst_79 = arith.constant 0.000000e+00 : f32
    %82 = vector.broadcast %cst_79 : f32 to vector<16x32xf32>
    %83 = arith.minimumf %79, %82 : vector<16x32xf32>
    %84 = math.exp %83 : vector<16x32xf32>
    %cst_80 = arith.constant 1.000000e+00 : f32
    %85 = vector.broadcast %cst_80 : f32 to vector<16x32xf32>
    %86 = arith.subf %84, %85 : vector<16x32xf32>
    %87 = arith.select %81, %79, %86 : vector<16x32xi1>, vector<16x32xf32>
    %88 = vector.extract_strided_slice %15 {offsets = [0, 0], sizes = [32, 128], strides = [1, 1]} : vector<64x128xf32> to vector<32x128xf32>
    %cst_81 = arith.constant dense<0.000000e+00> : vector<16x128xf32>
    %89 = tpu.matmul %87, %88, %cst_81 {dimension_numbers = #tpu.dot_dimension_numbers<[1], [0], [0], [1], [0, 0, 1, 1], [], []>} : vector<16x32xf32>, vector<32x128xf32>, vector<16x128xf32> -> vector<16x128xf32>
    %90 = vector.extract_strided_slice %15 {offsets = [32, 0], sizes = [32, 128], strides = [1, 1]} : vector<64x128xf32> to vector<32x128xf32>
    %cst_82 = arith.constant dense<0.000000e+00> : vector<16x128xf32>
    %91 = tpu.matmul %36, %90, %cst_82 {dimension_numbers = #tpu.dot_dimension_numbers<[1], [0], [0], [1], [0, 0, 1, 1], [], []>} : vector<16x32xf32>, vector<32x128xf32>, vector<16x128xf32> -> vector<16x128xf32>
    %92 = arith.addf %89, %91 : vector<16x128xf32>
    %93 = vector.broadcast %16 : vector<1x128xf32> to vector<16x128xf32>
    %94 = arith.addf %92, %93 : vector<16x128xf32>
    %95 = vector.extract_strided_slice %94 {offsets = [0, 0], sizes = [16, 32], strides = [1, 1]} : vector<16x128xf32> to vector<16x32xf32>
    %96 = arith.negf %95 : vector<16x32xf32>
    %97 = math.exp %96 : vector<16x32xf32>
    %cst_83 = arith.constant 1.000000e+00 : f32
    %98 = vector.broadcast %cst_83 : f32 to vector<16x32xf32>
    %99 = arith.addf %98, %97 : vector<16x32xf32>
    %100 = arith.divf %98, %99 : vector<16x32xf32>
    %101 = vector.extract_strided_slice %94 {offsets = [0, 32], sizes = [16, 32], strides = [1, 1]} : vector<16x128xf32> to vector<16x32xf32>
    %102 = arith.negf %101 : vector<16x32xf32>
    %103 = math.exp %102 : vector<16x32xf32>
    %cst_84 = arith.constant 1.000000e+00 : f32
    %104 = vector.broadcast %cst_84 : f32 to vector<16x32xf32>
    %105 = arith.addf %104, %103 : vector<16x32xf32>
    %106 = arith.divf %104, %105 : vector<16x32xf32>
    %107 = vector.extract_strided_slice %94 {offsets = [0, 64], sizes = [16, 32], strides = [1, 1]} : vector<16x128xf32> to vector<16x32xf32>
    %108 = vector.extract_strided_slice %94 {offsets = [0, 96], sizes = [16, 32], strides = [1, 1]} : vector<16x128xf32> to vector<16x32xf32>
    %109 = arith.mulf %100, %108 : vector<16x32xf32>
    %110 = arith.addf %107, %109 : vector<16x32xf32>
    %111 = math.tanh %110 : vector<16x32xf32>
    %cst_85 = arith.constant 1.000000e+00 : f32
    %112 = vector.broadcast %cst_85 : f32 to vector<16x32xf32>
    %113 = arith.subf %112, %106 : vector<16x32xf32>
    %114 = arith.mulf %113, %111 : vector<16x32xf32>
    %115 = arith.mulf %106, %36 : vector<16x32xf32>
    %116 = arith.addf %114, %115 : vector<16x32xf32>
    %cst_86 = arith.constant 0.000000e+00 : f32
    %117 = vector.broadcast %cst_86 : f32 to vector<16x32xf32>
    %118 = arith.maximumf %116, %117 : vector<16x32xf32>
    %cst_87 = arith.constant dense<0.000000e+00> : vector<16x32xf32>
    %119 = tpu.matmul %118, %17, %cst_87 {dimension_numbers = #tpu.dot_dimension_numbers<[1], [0], [0], [1], [0, 0, 1, 1], [], []>} : vector<16x32xf32>, vector<32x32xf32>, vector<16x32xf32> -> vector<16x32xf32>
    %cst_88 = arith.constant dense<0.000000e+00> : vector<16x2xf32>
    %120 = tpu.matmul %119, %18, %cst_88 {dimension_numbers = #tpu.dot_dimension_numbers<[1], [0], [0], [1], [0, 0, 1, 1], [], []>} : vector<16x32xf32>, vector<32x2xf32>, vector<16x2xf32> -> vector<16x2xf32>
    %121 = vector.extract_strided_slice %120 {offsets = [0, 0], sizes = [16, 1], strides = [1, 1]} : vector<16x2xf32> to vector<16x1xf32>
    %cst_89 = arith.constant dense<0.000000e+00> : vector<32x1xf32>
    %122 = tpu.matmul %2, %121, %cst_89 {dimension_numbers = #tpu.dot_dimension_numbers<[1], [0], [0], [1], [0, 0, 1, 1], [], []>} : vector<32x16xf32>, vector<16x1xf32>, vector<32x1xf32> -> vector<32x1xf32>
    %123 = vector.extract_strided_slice %120 {offsets = [0, 1], sizes = [16, 1], strides = [1, 1]} : vector<16x2xf32> to vector<16x1xf32>
    %cst_90 = arith.constant dense<0.000000e+00> : vector<32x1xf32>
    %124 = tpu.matmul %3, %123, %cst_90 {dimension_numbers = #tpu.dot_dimension_numbers<[1], [0], [0], [1], [0, 0, 1, 1], [], []>} : vector<32x16xf32>, vector<16x1xf32>, vector<32x1xf32> -> vector<32x1xf32>
    %125 = arith.addf %122, %124 : vector<32x1xf32>
    %cst_91 = arith.constant 0.000000e+00 : f32
    %126 = vector.broadcast %cst_91 : f32 to vector<32x1xf32>
    %127 = arith.cmpf ogt, %125, %126 : vector<32x1xf32>
    %cst_92 = arith.constant 0.00999999977 : f32
    %128 = vector.broadcast %cst_92 : f32 to vector<32x1xf32>
    %129 = arith.mulf %128, %125 : vector<32x1xf32>
    %130 = arith.select %127, %125, %129 : vector<32x1xi1>, vector<32x1xf32>
    %cst_93 = arith.constant 0.000000e+00 : f32
    %131 = vector.broadcast %cst_93 : f32 to vector<32x16xf32>
    %132 = arith.cmpf ogt, %3, %131 : vector<32x16xf32>
    %cst_94 = arith.constant -1.000000e+30 : f32
    %133 = vector.shape_cast %130 : vector<32x1xf32> to vector<32x1xf32>
    %134 = vector.broadcast %133 : vector<32x1xf32> to vector<32x16xf32>
    %135 = vector.broadcast %cst_94 : f32 to vector<32x16xf32>
    %136 = arith.select %132, %134, %135 : vector<32x16xi1>, vector<32x16xf32>
    %cst_95 = arith.constant dense<0xFF800000> : vector<16xf32>
    %137 = vector.multi_reduction <maximumf>, %136, %cst_95 [0] : vector<32x16xf32> to vector<16xf32>
    %138 = vector.shape_cast %137 : vector<16xf32> to vector<1x16xf32>
    %139 = vector.broadcast %138 : vector<1x16xf32> to vector<32x16xf32>
    %140 = arith.mulf %3, %139 : vector<32x16xf32>
    %cst_96 = arith.constant dense<0.000000e+00> : vector<32xf32>
    %141 = vector.multi_reduction <add>, %140, %cst_96 [1] : vector<32x16xf32> to vector<32xf32>
    %142 = vector.shape_cast %141 : vector<32xf32> to vector<32x1xf32>
    %143 = arith.subf %130, %142 : vector<32x1xf32>
    %144 = math.exp %143 : vector<32x1xf32>
    %cst_97 = arith.constant dense<0.000000e+00> : vector<16x1xf32>
    %145 = tpu.matmul %4, %144, %cst_97 {dimension_numbers = #tpu.dot_dimension_numbers<[1], [0], [0], [1], [0, 0, 1, 1], [], []>} : vector<16x32xf32>, vector<32x1xf32>, vector<16x1xf32> -> vector<16x1xf32>
    %cst_98 = arith.constant dense<0.000000e+00> : vector<32x1xf32>
    %146 = tpu.matmul %3, %145, %cst_98 {dimension_numbers = #tpu.dot_dimension_numbers<[1], [0], [0], [1], [0, 0, 1, 1], [], []>} : vector<32x16xf32>, vector<16x1xf32>, vector<32x1xf32> -> vector<32x1xf32>
    %cst_99 = arith.constant 1.000000e-16 : f32
    %147 = vector.broadcast %cst_99 : f32 to vector<32x1xf32>
    %148 = arith.addf %146, %147 : vector<32x1xf32>
    %149 = arith.divf %144, %148 : vector<32x1xf32>
    %cst_100 = arith.constant dense<0.000000e+00> : vector<32x32xf32>
    %150 = tpu.matmul %2, %119, %cst_100 {dimension_numbers = #tpu.dot_dimension_numbers<[1], [0], [0], [1], [0, 0, 1, 1], [], []>} : vector<32x16xf32>, vector<16x32xf32>, vector<32x32xf32> -> vector<32x32xf32>
    %151 = vector.broadcast %149 : vector<32x1xf32> to vector<32x32xf32>
    %152 = arith.mulf %150, %151 : vector<32x32xf32>
    %cst_101 = arith.constant dense<0.000000e+00> : vector<16x32xf32>
    %153 = tpu.matmul %4, %152, %cst_101 {dimension_numbers = #tpu.dot_dimension_numbers<[1], [0], [0], [1], [0, 0, 1, 1], [], []>} : vector<16x32xf32>, vector<32x32xf32>, vector<16x32xf32> -> vector<16x32xf32>
    %154 = vector.broadcast %19 : vector<1x32xf32> to vector<16x32xf32>
    %155 = arith.addf %153, %154 : vector<16x32xf32>
    %cst_102 = arith.constant 0.000000e+00 : f32
    %156 = vector.broadcast %cst_102 : f32 to vector<16x32xf32>
    %157 = arith.cmpf ogt, %155, %156 : vector<16x32xf32>
    %cst_103 = arith.constant 0.000000e+00 : f32
    %158 = vector.broadcast %cst_103 : f32 to vector<16x32xf32>
    %159 = arith.minimumf %155, %158 : vector<16x32xf32>
    %160 = math.exp %159 : vector<16x32xf32>
    %cst_104 = arith.constant 1.000000e+00 : f32
    %161 = vector.broadcast %cst_104 : f32 to vector<16x32xf32>
    %162 = arith.subf %160, %161 : vector<16x32xf32>
    %163 = arith.select %157, %155, %162 : vector<16x32xi1>, vector<16x32xf32>
    %164 = vector.extract_strided_slice %20 {offsets = [0, 0], sizes = [32, 128], strides = [1, 1]} : vector<64x128xf32> to vector<32x128xf32>
    %cst_105 = arith.constant dense<0.000000e+00> : vector<16x128xf32>
    %165 = tpu.matmul %163, %164, %cst_105 {dimension_numbers = #tpu.dot_dimension_numbers<[1], [0], [0], [1], [0, 0, 1, 1], [], []>} : vector<16x32xf32>, vector<32x128xf32>, vector<16x128xf32> -> vector<16x128xf32>
    %166 = vector.extract_strided_slice %20 {offsets = [32, 0], sizes = [32, 128], strides = [1, 1]} : vector<64x128xf32> to vector<32x128xf32>
    %cst_106 = arith.constant dense<0.000000e+00> : vector<16x128xf32>
    %167 = tpu.matmul %118, %166, %cst_106 {dimension_numbers = #tpu.dot_dimension_numbers<[1], [0], [0], [1], [0, 0, 1, 1], [], []>} : vector<16x32xf32>, vector<32x128xf32>, vector<16x128xf32> -> vector<16x128xf32>
    %168 = arith.addf %165, %167 : vector<16x128xf32>
    %169 = vector.broadcast %21 : vector<1x128xf32> to vector<16x128xf32>
    %170 = arith.addf %168, %169 : vector<16x128xf32>
    %171 = vector.extract_strided_slice %170 {offsets = [0, 0], sizes = [16, 32], strides = [1, 1]} : vector<16x128xf32> to vector<16x32xf32>
    %172 = arith.negf %171 : vector<16x32xf32>
    %173 = math.exp %172 : vector<16x32xf32>
    %cst_107 = arith.constant 1.000000e+00 : f32
    %174 = vector.broadcast %cst_107 : f32 to vector<16x32xf32>
    %175 = arith.addf %174, %173 : vector<16x32xf32>
    %176 = arith.divf %174, %175 : vector<16x32xf32>
    %177 = vector.extract_strided_slice %170 {offsets = [0, 32], sizes = [16, 32], strides = [1, 1]} : vector<16x128xf32> to vector<16x32xf32>
    %178 = arith.negf %177 : vector<16x32xf32>
    %179 = math.exp %178 : vector<16x32xf32>
    %cst_108 = arith.constant 1.000000e+00 : f32
    %180 = vector.broadcast %cst_108 : f32 to vector<16x32xf32>
    %181 = arith.addf %180, %179 : vector<16x32xf32>
    %182 = arith.divf %180, %181 : vector<16x32xf32>
    %183 = vector.extract_strided_slice %170 {offsets = [0, 64], sizes = [16, 32], strides = [1, 1]} : vector<16x128xf32> to vector<16x32xf32>
    %184 = vector.extract_strided_slice %170 {offsets = [0, 96], sizes = [16, 32], strides = [1, 1]} : vector<16x128xf32> to vector<16x32xf32>
    %185 = arith.mulf %176, %184 : vector<16x32xf32>
    %186 = arith.addf %183, %185 : vector<16x32xf32>
    %187 = math.tanh %186 : vector<16x32xf32>
    %cst_109 = arith.constant 1.000000e+00 : f32
    %188 = vector.broadcast %cst_109 : f32 to vector<16x32xf32>
    %189 = arith.subf %188, %182 : vector<16x32xf32>
    %190 = arith.mulf %189, %187 : vector<16x32xf32>
    %191 = arith.mulf %182, %118 : vector<16x32xf32>
    %192 = arith.addf %190, %191 : vector<16x32xf32>
    %cst_110 = arith.constant 0.000000e+00 : f32
    %193 = vector.broadcast %cst_110 : f32 to vector<16x32xf32>
    %194 = arith.maximumf %192, %193 : vector<16x32xf32>
    %cst_111 = arith.constant dense<0.000000e+00> : vector<2x32xf32>
    %195 = tpu.matmul %6, %194, %cst_111 {dimension_numbers = #tpu.dot_dimension_numbers<[1], [0], [0], [1], [0, 0, 1, 1], [], []>} : vector<2x16xf32>, vector<16x32xf32>, vector<2x32xf32> -> vector<2x32xf32>
    %cst_112 = arith.constant 0.000000e+00 : f32
    %196 = vector.broadcast %cst_112 : f32 to vector<2x32xf32>
    %197 = arith.maximumf %195, %196 : vector<2x32xf32>
    %cst_113 = arith.constant dense<0.000000e+00> : vector<16x32xf32>
    %198 = tpu.matmul %194, %22, %cst_113 {dimension_numbers = #tpu.dot_dimension_numbers<[1], [0], [0], [1], [0, 0, 1, 1], [], []>} : vector<16x32xf32>, vector<32x32xf32>, vector<16x32xf32> -> vector<16x32xf32>
    %199 = vector.extract_strided_slice %23 {offsets = [0, 0], sizes = [32, 1], strides = [1, 1]} : vector<32x2xf32> to vector<32x1xf32>
    %cst_114 = arith.constant dense<0.000000e+00> : vector<16x1xf32>
    %200 = tpu.matmul %198, %199, %cst_114 {dimension_numbers = #tpu.dot_dimension_numbers<[1], [0], [0], [1], [0, 0, 1, 1], [], []>} : vector<16x32xf32>, vector<32x1xf32>, vector<16x1xf32> -> vector<16x1xf32>
    %cst_115 = arith.constant dense<0.000000e+00> : vector<2x32xf32>
    %201 = tpu.matmul %197, %22, %cst_115 {dimension_numbers = #tpu.dot_dimension_numbers<[1], [0], [0], [1], [0, 0, 1, 1], [], []>} : vector<2x32xf32>, vector<32x32xf32>, vector<2x32xf32> -> vector<2x32xf32>
    %202 = vector.extract_strided_slice %23 {offsets = [0, 1], sizes = [32, 1], strides = [1, 1]} : vector<32x2xf32> to vector<32x1xf32>
    %cst_116 = arith.constant dense<0.000000e+00> : vector<2x1xf32>
    %203 = tpu.matmul %201, %202, %cst_116 {dimension_numbers = #tpu.dot_dimension_numbers<[1], [0], [0], [1], [0, 0, 1, 1], [], []>} : vector<2x32xf32>, vector<32x1xf32>, vector<2x1xf32> -> vector<2x1xf32>
    %cst_117 = arith.constant dense<0.000000e+00> : vector<16x1xf32>
    %204 = tpu.matmul %5, %203, %cst_117 {dimension_numbers = #tpu.dot_dimension_numbers<[1], [0], [0], [1], [0, 0, 1, 1], [], []>} : vector<16x2xf32>, vector<2x1xf32>, vector<16x1xf32> -> vector<16x1xf32>
    %205 = arith.addf %200, %204 : vector<16x1xf32>
    %cst_118 = arith.constant 0.000000e+00 : f32
    %206 = vector.broadcast %cst_118 : f32 to vector<16x1xf32>
    %207 = arith.cmpf ogt, %205, %206 : vector<16x1xf32>
    %cst_119 = arith.constant 0.00999999977 : f32
    %208 = vector.broadcast %cst_119 : f32 to vector<16x1xf32>
    %209 = arith.mulf %208, %205 : vector<16x1xf32>
    %210 = arith.select %207, %205, %209 : vector<16x1xi1>, vector<16x1xf32>
    %cst_120 = arith.constant 0.000000e+00 : f32
    %211 = vector.broadcast %cst_120 : f32 to vector<16x2xf32>
    %212 = arith.cmpf ogt, %5, %211 : vector<16x2xf32>
    %cst_121 = arith.constant -1.000000e+30 : f32
    %213 = vector.shape_cast %210 : vector<16x1xf32> to vector<16x1xf32>
    %214 = vector.broadcast %213 : vector<16x1xf32> to vector<16x2xf32>
    %215 = vector.broadcast %cst_121 : f32 to vector<16x2xf32>
    %216 = arith.select %212, %214, %215 : vector<16x2xi1>, vector<16x2xf32>
    %cst_122 = arith.constant dense<0xFF800000> : vector<2xf32>
    %217 = vector.multi_reduction <maximumf>, %216, %cst_122 [0] : vector<16x2xf32> to vector<2xf32>
    %218 = vector.shape_cast %217 : vector<2xf32> to vector<1x2xf32>
    %219 = vector.broadcast %218 : vector<1x2xf32> to vector<16x2xf32>
    %220 = arith.mulf %5, %219 : vector<16x2xf32>
    %cst_123 = arith.constant dense<0.000000e+00> : vector<16xf32>
    %221 = vector.multi_reduction <add>, %220, %cst_123 [1] : vector<16x2xf32> to vector<16xf32>
    %222 = vector.shape_cast %221 : vector<16xf32> to vector<16x1xf32>
    %223 = arith.subf %210, %222 : vector<16x1xf32>
    %224 = math.exp %223 : vector<16x1xf32>
    %cst_124 = arith.constant dense<0.000000e+00> : vector<2x1xf32>
    %225 = tpu.matmul %6, %224, %cst_124 {dimension_numbers = #tpu.dot_dimension_numbers<[1], [0], [0], [1], [0, 0, 1, 1], [], []>} : vector<2x16xf32>, vector<16x1xf32>, vector<2x1xf32> -> vector<2x1xf32>
    %cst_125 = arith.constant dense<0.000000e+00> : vector<16x1xf32>
    %226 = tpu.matmul %5, %225, %cst_125 {dimension_numbers = #tpu.dot_dimension_numbers<[1], [0], [0], [1], [0, 0, 1, 1], [], []>} : vector<16x2xf32>, vector<2x1xf32>, vector<16x1xf32> -> vector<16x1xf32>
    %cst_126 = arith.constant 1.000000e-16 : f32
    %227 = vector.broadcast %cst_126 : f32 to vector<16x1xf32>
    %228 = arith.addf %226, %227 : vector<16x1xf32>
    %229 = arith.divf %224, %228 : vector<16x1xf32>
    %230 = vector.broadcast %229 : vector<16x1xf32> to vector<16x32xf32>
    %231 = arith.mulf %198, %230 : vector<16x32xf32>
    %cst_127 = arith.constant dense<0.000000e+00> : vector<2x32xf32>
    %232 = tpu.matmul %6, %231, %cst_127 {dimension_numbers = #tpu.dot_dimension_numbers<[1], [0], [0], [1], [0, 0, 1, 1], [], []>} : vector<2x16xf32>, vector<16x32xf32>, vector<2x32xf32> -> vector<2x32xf32>
    %233 = vector.broadcast %24 : vector<1x32xf32> to vector<2x32xf32>
    %234 = arith.addf %232, %233 : vector<2x32xf32>
    %cst_128 = arith.constant 0.000000e+00 : f32
    %235 = vector.broadcast %cst_128 : f32 to vector<2x32xf32>
    %236 = arith.cmpf ogt, %234, %235 : vector<2x32xf32>
    %cst_129 = arith.constant 0.000000e+00 : f32
    %237 = vector.broadcast %cst_129 : f32 to vector<2x32xf32>
    %238 = arith.minimumf %234, %237 : vector<2x32xf32>
    %239 = math.exp %238 : vector<2x32xf32>
    %cst_130 = arith.constant 1.000000e+00 : f32
    %240 = vector.broadcast %cst_130 : f32 to vector<2x32xf32>
    %241 = arith.subf %239, %240 : vector<2x32xf32>
    %242 = arith.select %236, %234, %241 : vector<2x32xi1>, vector<2x32xf32>
    %243 = vector.extract_strided_slice %25 {offsets = [0, 0], sizes = [32, 128], strides = [1, 1]} : vector<64x128xf32> to vector<32x128xf32>
    %cst_131 = arith.constant dense<0.000000e+00> : vector<2x128xf32>
    %244 = tpu.matmul %242, %243, %cst_131 {dimension_numbers = #tpu.dot_dimension_numbers<[1], [0], [0], [1], [0, 0, 1, 1], [], []>} : vector<2x32xf32>, vector<32x128xf32>, vector<2x128xf32> -> vector<2x128xf32>
    %245 = vector.extract_strided_slice %25 {offsets = [32, 0], sizes = [32, 128], strides = [1, 1]} : vector<64x128xf32> to vector<32x128xf32>
    %cst_132 = arith.constant dense<0.000000e+00> : vector<2x128xf32>
    %246 = tpu.matmul %197, %245, %cst_132 {dimension_numbers = #tpu.dot_dimension_numbers<[1], [0], [0], [1], [0, 0, 1, 1], [], []>} : vector<2x32xf32>, vector<32x128xf32>, vector<2x128xf32> -> vector<2x128xf32>
    %247 = arith.addf %244, %246 : vector<2x128xf32>
    %248 = vector.broadcast %26 : vector<1x128xf32> to vector<2x128xf32>
    %249 = arith.addf %247, %248 : vector<2x128xf32>
    %250 = vector.extract_strided_slice %249 {offsets = [0, 0], sizes = [2, 32], strides = [1, 1]} : vector<2x128xf32> to vector<2x32xf32>
    %251 = arith.negf %250 : vector<2x32xf32>
    %252 = math.exp %251 : vector<2x32xf32>
    %cst_133 = arith.constant 1.000000e+00 : f32
    %253 = vector.broadcast %cst_133 : f32 to vector<2x32xf32>
    %254 = arith.addf %253, %252 : vector<2x32xf32>
    %255 = arith.divf %253, %254 : vector<2x32xf32>
    %256 = vector.extract_strided_slice %249 {offsets = [0, 32], sizes = [2, 32], strides = [1, 1]} : vector<2x128xf32> to vector<2x32xf32>
    %257 = arith.negf %256 : vector<2x32xf32>
    %258 = math.exp %257 : vector<2x32xf32>
    %cst_134 = arith.constant 1.000000e+00 : f32
    %259 = vector.broadcast %cst_134 : f32 to vector<2x32xf32>
    %260 = arith.addf %259, %258 : vector<2x32xf32>
    %261 = arith.divf %259, %260 : vector<2x32xf32>
    %262 = vector.extract_strided_slice %249 {offsets = [0, 64], sizes = [2, 32], strides = [1, 1]} : vector<2x128xf32> to vector<2x32xf32>
    %263 = vector.extract_strided_slice %249 {offsets = [0, 96], sizes = [2, 32], strides = [1, 1]} : vector<2x128xf32> to vector<2x32xf32>
    %264 = arith.mulf %255, %263 : vector<2x32xf32>
    %265 = arith.addf %262, %264 : vector<2x32xf32>
    %266 = math.tanh %265 : vector<2x32xf32>
    %cst_135 = arith.constant 1.000000e+00 : f32
    %267 = vector.broadcast %cst_135 : f32 to vector<2x32xf32>
    %268 = arith.subf %267, %261 : vector<2x32xf32>
    %269 = arith.mulf %268, %266 : vector<2x32xf32>
    %270 = arith.mulf %261, %197 : vector<2x32xf32>
    %271 = arith.addf %269, %270 : vector<2x32xf32>
    %cst_136 = arith.constant 0.000000e+00 : f32
    %272 = vector.broadcast %cst_136 : f32 to vector<2x32xf32>
    %273 = arith.maximumf %271, %272 : vector<2x32xf32>
    %cst_137 = arith.constant dense<0.000000e+00> : vector<2x32xf32>
    %274 = tpu.matmul %273, %22, %cst_137 {dimension_numbers = #tpu.dot_dimension_numbers<[1], [0], [0], [1], [0, 0, 1, 1], [], []>} : vector<2x32xf32>, vector<32x32xf32>, vector<2x32xf32> -> vector<2x32xf32>
    %275 = vector.extract_strided_slice %23 {offsets = [0, 1], sizes = [32, 1], strides = [1, 1]} : vector<32x2xf32> to vector<32x1xf32>
    %cst_138 = arith.constant dense<0.000000e+00> : vector<2x1xf32>
    %276 = tpu.matmul %274, %275, %cst_138 {dimension_numbers = #tpu.dot_dimension_numbers<[1], [0], [0], [1], [0, 0, 1, 1], [], []>} : vector<2x32xf32>, vector<32x1xf32>, vector<2x1xf32> -> vector<2x1xf32>
    %cst_139 = arith.constant dense<0.000000e+00> : vector<16x1xf32>
    %277 = tpu.matmul %5, %276, %cst_139 {dimension_numbers = #tpu.dot_dimension_numbers<[1], [0], [0], [1], [0, 0, 1, 1], [], []>} : vector<16x2xf32>, vector<2x1xf32>, vector<16x1xf32> -> vector<16x1xf32>
    %278 = arith.addf %200, %277 : vector<16x1xf32>
    %cst_140 = arith.constant 0.000000e+00 : f32
    %279 = vector.broadcast %cst_140 : f32 to vector<16x1xf32>
    %280 = arith.cmpf ogt, %278, %279 : vector<16x1xf32>
    %cst_141 = arith.constant 0.00999999977 : f32
    %281 = vector.broadcast %cst_141 : f32 to vector<16x1xf32>
    %282 = arith.mulf %281, %278 : vector<16x1xf32>
    %283 = arith.select %280, %278, %282 : vector<16x1xi1>, vector<16x1xf32>
    %cst_142 = arith.constant 0.000000e+00 : f32
    %284 = vector.broadcast %cst_142 : f32 to vector<16x2xf32>
    %285 = arith.cmpf ogt, %5, %284 : vector<16x2xf32>
    %cst_143 = arith.constant -1.000000e+30 : f32
    %286 = vector.shape_cast %283 : vector<16x1xf32> to vector<16x1xf32>
    %287 = vector.broadcast %286 : vector<16x1xf32> to vector<16x2xf32>
    %288 = vector.broadcast %cst_143 : f32 to vector<16x2xf32>
    %289 = arith.select %285, %287, %288 : vector<16x2xi1>, vector<16x2xf32>
    %cst_144 = arith.constant dense<0xFF800000> : vector<2xf32>
    %290 = vector.multi_reduction <maximumf>, %289, %cst_144 [0] : vector<16x2xf32> to vector<2xf32>
    %291 = vector.shape_cast %290 : vector<2xf32> to vector<1x2xf32>
    %292 = vector.broadcast %291 : vector<1x2xf32> to vector<16x2xf32>
    %293 = arith.mulf %5, %292 : vector<16x2xf32>
    %cst_145 = arith.constant dense<0.000000e+00> : vector<16xf32>
    %294 = vector.multi_reduction <add>, %293, %cst_145 [1] : vector<16x2xf32> to vector<16xf32>
    %295 = vector.shape_cast %294 : vector<16xf32> to vector<16x1xf32>
    %296 = arith.subf %283, %295 : vector<16x1xf32>
    %297 = math.exp %296 : vector<16x1xf32>
    %cst_146 = arith.constant dense<0.000000e+00> : vector<2x1xf32>
    %298 = tpu.matmul %6, %297, %cst_146 {dimension_numbers = #tpu.dot_dimension_numbers<[1], [0], [0], [1], [0, 0, 1, 1], [], []>} : vector<2x16xf32>, vector<16x1xf32>, vector<2x1xf32> -> vector<2x1xf32>
    %cst_147 = arith.constant dense<0.000000e+00> : vector<16x1xf32>
    %299 = tpu.matmul %5, %298, %cst_147 {dimension_numbers = #tpu.dot_dimension_numbers<[1], [0], [0], [1], [0, 0, 1, 1], [], []>} : vector<16x2xf32>, vector<2x1xf32>, vector<16x1xf32> -> vector<16x1xf32>
    %cst_148 = arith.constant 1.000000e-16 : f32
    %300 = vector.broadcast %cst_148 : f32 to vector<16x1xf32>
    %301 = arith.addf %299, %300 : vector<16x1xf32>
    %302 = arith.divf %297, %301 : vector<16x1xf32>
    %303 = vector.broadcast %302 : vector<16x1xf32> to vector<16x32xf32>
    %304 = arith.mulf %198, %303 : vector<16x32xf32>
    %cst_149 = arith.constant dense<0.000000e+00> : vector<2x32xf32>
    %305 = tpu.matmul %6, %304, %cst_149 {dimension_numbers = #tpu.dot_dimension_numbers<[1], [0], [0], [1], [0, 0, 1, 1], [], []>} : vector<2x16xf32>, vector<16x32xf32>, vector<2x32xf32> -> vector<2x32xf32>
    %306 = vector.broadcast %24 : vector<1x32xf32> to vector<2x32xf32>
    %307 = arith.addf %305, %306 : vector<2x32xf32>
    %cst_150 = arith.constant 0.000000e+00 : f32
    %308 = vector.broadcast %cst_150 : f32 to vector<2x32xf32>
    %309 = arith.cmpf ogt, %307, %308 : vector<2x32xf32>
    %cst_151 = arith.constant 0.000000e+00 : f32
    %310 = vector.broadcast %cst_151 : f32 to vector<2x32xf32>
    %311 = arith.minimumf %307, %310 : vector<2x32xf32>
    %312 = math.exp %311 : vector<2x32xf32>
    %cst_152 = arith.constant 1.000000e+00 : f32
    %313 = vector.broadcast %cst_152 : f32 to vector<2x32xf32>
    %314 = arith.subf %312, %313 : vector<2x32xf32>
    %315 = arith.select %309, %307, %314 : vector<2x32xi1>, vector<2x32xf32>
    %316 = vector.extract_strided_slice %25 {offsets = [0, 0], sizes = [32, 128], strides = [1, 1]} : vector<64x128xf32> to vector<32x128xf32>
    %cst_153 = arith.constant dense<0.000000e+00> : vector<2x128xf32>
    %317 = tpu.matmul %315, %316, %cst_153 {dimension_numbers = #tpu.dot_dimension_numbers<[1], [0], [0], [1], [0, 0, 1, 1], [], []>} : vector<2x32xf32>, vector<32x128xf32>, vector<2x128xf32> -> vector<2x128xf32>
    %318 = vector.extract_strided_slice %25 {offsets = [32, 0], sizes = [32, 128], strides = [1, 1]} : vector<64x128xf32> to vector<32x128xf32>
    %cst_154 = arith.constant dense<0.000000e+00> : vector<2x128xf32>
    %319 = tpu.matmul %273, %318, %cst_154 {dimension_numbers = #tpu.dot_dimension_numbers<[1], [0], [0], [1], [0, 0, 1, 1], [], []>} : vector<2x32xf32>, vector<32x128xf32>, vector<2x128xf32> -> vector<2x128xf32>
    %320 = arith.addf %317, %319 : vector<2x128xf32>
    %321 = vector.broadcast %26 : vector<1x128xf32> to vector<2x128xf32>
    %322 = arith.addf %320, %321 : vector<2x128xf32>
    %323 = vector.extract_strided_slice %322 {offsets = [0, 0], sizes = [2, 32], strides = [1, 1]} : vector<2x128xf32> to vector<2x32xf32>
    %324 = arith.negf %323 : vector<2x32xf32>
    %325 = math.exp %324 : vector<2x32xf32>
    %cst_155 = arith.constant 1.000000e+00 : f32
    %326 = vector.broadcast %cst_155 : f32 to vector<2x32xf32>
    %327 = arith.addf %326, %325 : vector<2x32xf32>
    %328 = arith.divf %326, %327 : vector<2x32xf32>
    %329 = vector.extract_strided_slice %322 {offsets = [0, 32], sizes = [2, 32], strides = [1, 1]} : vector<2x128xf32> to vector<2x32xf32>
    %330 = arith.negf %329 : vector<2x32xf32>
    %331 = math.exp %330 : vector<2x32xf32>
    %cst_156 = arith.constant 1.000000e+00 : f32
    %332 = vector.broadcast %cst_156 : f32 to vector<2x32xf32>
    %333 = arith.addf %332, %331 : vector<2x32xf32>
    %334 = arith.divf %332, %333 : vector<2x32xf32>
    %335 = vector.extract_strided_slice %322 {offsets = [0, 64], sizes = [2, 32], strides = [1, 1]} : vector<2x128xf32> to vector<2x32xf32>
    %336 = vector.extract_strided_slice %322 {offsets = [0, 96], sizes = [2, 32], strides = [1, 1]} : vector<2x128xf32> to vector<2x32xf32>
    %337 = arith.mulf %328, %336 : vector<2x32xf32>
    %338 = arith.addf %335, %337 : vector<2x32xf32>
    %339 = math.tanh %338 : vector<2x32xf32>
    %cst_157 = arith.constant 1.000000e+00 : f32
    %340 = vector.broadcast %cst_157 : f32 to vector<2x32xf32>
    %341 = arith.subf %340, %334 : vector<2x32xf32>
    %342 = arith.mulf %341, %339 : vector<2x32xf32>
    %343 = arith.mulf %334, %273 : vector<2x32xf32>
    %344 = arith.addf %342, %343 : vector<2x32xf32>
    %cst_158 = arith.constant 0.000000e+00 : f32
    %345 = vector.broadcast %cst_158 : f32 to vector<2x32xf32>
    %346 = arith.maximumf %344, %345 : vector<2x32xf32>
    %cst_159 = arith.constant dense<0.000000e+00> : vector<2x8xf32>
    %347 = tpu.matmul %346, %27, %cst_159 {dimension_numbers = #tpu.dot_dimension_numbers<[1], [0], [0], [1], [0, 0, 1, 1], [], []>} : vector<2x32xf32>, vector<32x8xf32>, vector<2x8xf32> -> vector<2x8xf32>
    %348 = vector.broadcast %28 : vector<1x8xf32> to vector<2x8xf32>
    %349 = arith.addf %347, %348 : vector<2x8xf32>
    %c0_160 = arith.constant 0 : index
    %c0_161 = arith.constant 0 : index
    %350 = vector.load %arg29[%c0_160, %c0_161] : memref<2x8xf32, #tpu.memory_space<vmem>>, vector<2x8xf32>
    tpu.vector_store %arg29[%c0_160, %c0_161], %349 {strides = array<i32>} : memref<2x8xf32, #tpu.memory_space<vmem>>, vector<2x8xf32>,
    return
  }
}

</mosaic_0001>

<bundles_post_ra>
// kernel: attentive_fp_forward.1
= control target key start
LH: loop header
LB: loop body
LE: loop exit
PB: predicated region body
PF: predicated region fallthrough
CT: control target
= control target key end

     0   :  { %s5525_s6 = smov 1   ;;  %s5526_s10 = smov 2   ;;  %s6272_s0 = inlined_call_operand.smem [shape: u32[30], index: -1, kind: input, shape index: {}] }
   0x1   :  { %s5571_s5 = sld [smem:[%s6272_s0]]   ;;  %s5527_s14 = smov 3  }
   0x2   :  { %s5576_s9 = sld [smem:[%s6272_s0 + %s5525_s6]]   ;;  %s5528_s18 = smov 4  }
   0x3   :  { %s5581_s13 = sld [smem:[%s6272_s0 + %s5526_s10]]   ;;  %s5529_s22 = smov 5  }
   0x4   :  { %s5586_s17 = sld [smem:[%s6272_s0 + %s5527_s14]]   ;;  %s5530_s26 = smov 6  }
   0x5   :  { %s5591_s21 = sld [smem:[%s6272_s0 + %s5528_s18]]   ;;  %s5531_s30 = smov 7  }
   0x6   :  { %s5596_s25 = sld [smem:[%s6272_s0 + %s5529_s22]]   ;;  %s5532_s4 = smov 8  }
   0x7   :  { %s5601_s29 = sld [smem:[%s6272_s0 + %s5530_s26]]   ;;  %s5533_s10 = smov 9  }
   0x8   :  { %s5606_s3 = sld [smem:[%s6272_s0 + %s5531_s30]]   ;;  %s5534_s15 = smov 10  }
   0x9   :  { %s5611_s8 = sld [smem:[%s6272_s0 + %s5532_s4]]   ;;  %s5535_s20 = smov 11  }
   0xa   :  { %s5616_s14 = sld [smem:[%s6272_s0 + %s5533_s10]]   ;;  %s5536_s26 = smov 12  }
   0xb   :  { %s5621_s19 = sld [smem:[%s6272_s0 + %s5534_s15]]   ;;  %s5537_s1 = smov 13  }
   0xc   :  { %6280 = sst [smem:[#allocation5_spill]] %s5596_s25  ;;  %s5538_s7 = smov 14  }
   0xd   :  { %6281 = sst [smem:[#allocation6_spill]] %s5601_s29  ;;  %s5539_s15 = smov 15  }
   0xe   :  { %s5626_s24 = sld [smem:[%s6272_s0 + %s5535_s20]]   ;;  %s5540_s22 = smov 16  }
   0xf   :  { %s5631_s30 = sld [smem:[%s6272_s0 + %s5536_s26]]   ;;  %s5541_s28 = smov 17  }
  0x10   :  { %s5636_s6 = sld [smem:[%s6272_s0 + %s5537_s1]]  }
  0x11   :  { %s5641_s12 = sld [smem:[%s6272_s0 + %s5538_s7]]   ;;  %s5542_s7 = smov 18  }
  0x12   :  { %s5646_s20 = sld [smem:[%s6272_s0 + %s5539_s15]]   ;;  %s5543_s15 = smov 19  }
  0x13   :  { %s5651_s27 = sld [smem:[%s6272_s0 + %s5540_s22]]   ;;  %s5544_s22 = smov 20  }
  0x14   :  { %s5656_s4 = sld [smem:[%s6272_s0 + %s5541_s28]]   ;;  %s5545_s28 = smov 21  }
  0x15   :  { %s5661_s25 = sld [smem:[%s6272_s0 + %s5542_s7]]   ;;  %s5546_s7 = smov 22  }
  0x16   :  { %s5666_s29 = sld [smem:[%s6272_s0 + %s5543_s15]]   ;;  %s5547_s15 = smov 23  }
  0x19   :  { %6282 = sst [smem:[#allocation7_spill]] %s5651_s27 }
  0x1a   :  { %6283 = sst [smem:[#allocation8_spill]] %s5656_s4 }
  0x1b   :  { %6284 = sst [smem:[#allocation9_spill]] %s5661_s25 }
  0x1c   :  { %6285 = sst [smem:[#allocation10_spill]] %s5666_s29 }
  0x1d   :  { %s5671_s27 = sld [smem:[%s6272_s0 + %s5544_s22]]   ;;  %s5548_s22 = smov 24  }
  0x1e   :  { %s5676_s4 = sld [smem:[%s6272_s0 + %s5545_s28]]   ;;  %s5549_s28 = smov 25  }
  0x1f   :  { %s5681_s25 = sld [smem:[%s6272_s0 + %s5546_s7]]   ;;  %s5550_s7 = smov 26  }
  0x20   :  { %s5686_s29 = sld [smem:[%s6272_s0 + %s5547_s15]]   ;;  %s5551_s15 = smov 27  }
  0x23   :  { %6286 = sst [smem:[#allocation11_spill]] %s5671_s27 }
  0x24   :  { %6287 = sst [smem:[#allocation12_spill]] %s5676_s4 }
  0x25   :  { %6288 = sst [smem:[#allocation13_spill]] %s5681_s25 }
  0x26   :  { %6289 = sst [smem:[#allocation14_spill]] %s5686_s29 }
  0x27   :  { %s5691_s27 = sld [smem:[%s6272_s0 + %s5548_s22]]   ;;  %s5552_s22 = smov 28  }
  0x28   :  { %s5696_s4 = sld [smem:[%s6272_s0 + %s5549_s28]]   ;;  %s5553_s28 = smov 29  }
  0x29   :  { %s5701_s25 = sld [smem:[%s6272_s0 + %s5550_s7]]  }
  0x2a   :  { %s5706_s29 = sld [smem:[%s6272_s0 + %s5551_s15]]  }
  0x2d   :  { %6290 = sst [smem:[#allocation15_spill]] %s5691_s27 }
  0x2e   :  { %6291 = sst [smem:[#allocation16_spill]] %s5696_s4 }
  0x2f   :  { %s5711_s27 = sld [smem:[%s6272_s0 + %s5552_s22]]  }
  0x30   :  { %s5716_s4 = sld [smem:[%s6272_s0 + %s5553_s28]]  }
  0x31   :  { %v142_v0 = vld [vmem:[%s5606_s3] sm:$0xff]  ;;  %v143_v1 = vld [vmem:[%s5606_s3 + $0x8] sm:$0xff]  ;;  %vm219_vm0 = vcmask 130048  }
  0x32   :  { %v123_v2 = vld [vmem:[%s5571_s5] sm:$0xff]  ;;  %v5105_v3 = vpack.c.bf16 %v143_v1, %v142_v0 }
  0x33   :  { %4685 = vmatprep.mubr.msk.f32.mxu1 %vm219_vm0, %v123_v2 }
  0x34   :  { %64 = vsyncpa [#allocation3], 0  ;;  %5106 = vmatprep.subr.bf16.mxu1 %v5105_v3  ;;  %v124_v4 = vld [vmem:[%s5571_s5 + $0x8] sm:$0xff]  ;;  %v149_v5 = vld [vmem:[%s5621_s19] sm:$0xff]  ;;  %vm404_vm3 = vcmask 261120   ;;  %vm583_vm4 = vcmask 64512  }
  0x35   :  { %5108 = vmatpush3.bf16.msra.mxu1 %v5105_v3  ;;  %v150_v6 = vld [vmem:[%s5621_s19 + $0x8] sm:$0xff]  ;;  %v151_v8 = vld [vmem:[%s5621_s19 + $0x10] sm:$0xff]  ;;  %v152_v9 = vld [vmem:[%s5621_s19 + $0x18] sm:$0xff]  ;;  %v5554_v1 = vmov 0   ;;  %s6292_s0 = sld [smem:[#allocation7_spill]]  ;;  %s5555_s5 = smov 32  }
  0x36   :  { %v5113_v7 = vpack.c.bf16 %v150_v6, %v149_v5  ;;  %v5117_v10 = vpack.c.bf16 %v152_v9, %v151_v8  ;;  %v5729_v11 = vld [vmem:[%s5581_s13] sm:$0xff]  ;;  %v5747_v24 = vld [vmem:[%s5581_s13 + $0x8] sm:$0xff]  ;;  %v5751_v25 = vld [vmem:[%s5581_s13 + $0x10] sm:$0xff]  ;;  %5388 = vset.pattern.permute.xlu0 %v5554_v1  ;;  %5389 = vset.pattern.permute.xlu1 %v5554_v1  ;;  %s6295_s3 = sld [smem:[#allocation11_spill]]  ;;  %s6297_s19 = sld [smem:[#allocation12_spill]] }
  0x37   :  { %v157_v12 = vld [vmem:[%s5631_s30] sm:$0xff]  ;;  %v5758_v26 = vld [vmem:[%s5581_s13 + $0x18] sm:$0xff]  ;;  %v154_v28 = vld [vmem:[%s5626_s24 + $0x8] sm:$0xff]  ;;  %s5556_s13 = smov 64   ;;  %s6299_s30 = sld [smem:[#allocation6_spill]] }
  0x38   :  { %4686 = vmatmul.mubr.msk.f32.vlgmr.msra.gmra.mrb[0].mxu1 %vm219_vm0, %v124_v4  ;;  %5114 = vmatprep.subr.bf16.mxu0 %v5113_v7  ;;  %v4338_v13 = vld [vmem:[%s5611_s8] ss:$0 sm:$0xff]  ;;  %v126_v30 = vld [vmem:[%s5576_s9 + $0x8] sm:$0xff]  ;;  %v155_v31 = vld [vmem:[%s5626_s24 + $0x10] sm:$0xff]  ;;  %s5558_s8 = smov 127   ;;  %s6303_s7 = sld [smem:[#allocation15_spill]] }
  0x39   :  { %5116 = vmatpush3.bf16.msra.mxu0 %v5113_v7  ;;  %4692 = vmatprep.mubr.msk.f32.mxu1 %vm219_vm0, %v5729_v11  ;;  %v125_v23 = vld [vmem:[%s5576_s9] sm:$0xff]  ;;  %v156_v32 = vld [vmem:[%s5626_s24 + $0x18] sm:$0xff]  ;;  %v127_v33 = vld [vmem:[%s5576_s9 + $0x10] sm:$0xff] }
  0x3a   :  { %5118 = vmatprep.subr.bf16.mxu0 %v5117_v10  ;;  %v153_v27 = vld [vmem:[%s5626_s24] sm:$0xff]  ;;  %v5129_v34 = vpack.c.bf16 %v156_v32, %v155_v31  ;;  %v128_v35 = vld [vmem:[%s5576_s9 + $0x18] sm:$0xff]  ;;  %v146_v38 = vld [vmem:[%s5616_s14 + $0x8] sm:$0xff]  ;;  %s6293_s9 = sld [smem:[#allocation8_spill]]  ;;  %s6298_s24 = sld [smem:[#allocation13_spill]] }
  0x3b   :  { %v5125_v29 = vpack.c.bf16 %v154_v28, %v153_v27  ;;  %v5773_v36 = vld [vmem:[%s5586_s17] sm:$0xff]  ;;  %v5782_v44 = vld [vmem:[%s5586_s17 + $0x8] sm:$0xff]  ;;  %v147_v48 = vld [vmem:[%s5616_s14 + $0x10] sm:$0xff] }
  0x3c   :  { %v145_v37 = vld [vmem:[%s5616_s14] sm:$0xff]  ;;  %v148_v49 = vld [vmem:[%s5616_s14 + $0x18] sm:$0xff]  ;;  %v5805_v50 = vld [vmem:[%s5586_s17 + $0x10] sm:$0xff]  ;;  %vm900_vm13 = vcmp.gt.f32.partialorder %v5782_v44, 0.0  ;;  %vm899_vm14 = vcmp.gt.f32.partialorder %v5773_v36, 0.0  ;;  %s6296_s14 = sld [smem:[#allocation10_spill]] }
  0x3d   :  { %5120 = vmatpush3.bf16.msra.mxu0 %v5117_v10  ;;  %v5133_v42 = vpack.c.bf16 %v146_v38, %v145_v37  ;;  %v5137_v51 = vpack.c.bf16 %v148_v49, %v147_v48  ;;  %v5810_v52 = vld [vmem:[%s5586_s17 + $0x18] sm:$0xff]  ;;  %vm901_vm15 = vcmp.gt.f32.partialorder %v5805_v50, 0.0  ;;  %s6294_s17 = sld [smem:[#allocation9_spill]] }
  0x3e   :  { %4719 = vmatprep.subr.mxu0 %v157_v12 }
 0x10b   :  { %v4687_v14 = vpop.f32.mrb[0].mxu1 }
 0x10c   :  { %v298_v15 = vadd.f32 %v4687_v14, %v4338_v13  ;;  %v292_v16 = vpop.f32.mrb[1].mxu1 }
 0x10d   :  { %v293_v17 = vadd.f32 %v4338_v13, %v292_v16 }
 0x10e   :  { %vm302_vm1 = vcmp.gt.f32.partialorder %v298_v15, 0.0  ;;  %v304_v18 = vmul.f32 0.01, %v298_v15 }
 0x10f   :  { %vm301_vm2 = vcmp.gt.f32.partialorder %v293_v17, 0.0  ;;  %v303_v19 = vmul.f32 0.01, %v293_v17 }
 0x110   :  { %v5735_v20 = vsel %vm302_vm1, %v298_v15, %v304_v18  ;;  %vm902_vm1 = vcmp.gt.f32.partialorder %v5810_v52, 0.0 }
 0x111   :  { %v5737_v21 = vsel %vm301_vm2, %v293_v17, %v303_v19 }
 0x112   :  { %4706 = vmatprep.mubr.msk.f32.mxu0 %vm404_vm3, %v5737_v21  ;;  %v5109_v22 = vpack.c.bf16 %v5735_v20, %v5737_v21 }
 0x113   :  { %4707 = vmatmul.mubr.msk.f32.vlgmr.msra.gmra.mrb[0].mxu0 %vm404_vm3, %v5735_v20 }
 0x114   :  { %5110 = vmatprep.subr.bf16.mxu1 %v5109_v22  ;;  %4720 = vmatpush3.msra.mxu0 %v157_v12 }
 0x115   :  { %5112 = vmatpush3.bf16.msra.mxu1 %v5109_v22  ;;  %4721 = vmatprep.mubr.msk.f32.mxu0 %vm583_vm4, %v125_v23 }
 0x116   :  { %5126 = vmatprep.subr.bf16.mxu0 %v5125_v29 }
 0x117   :  { %4722 = vmatmul.mubr.msk.f32.vlgmr.msra.gmra.mrb[2].mxu0 %vm583_vm4, %v126_v30 }
 0x118   :  { %4693 = vmatmul.mubr.msk.f32.vlgmr.msra.gmra.mrb[2].mxu1 %vm219_vm0, %v5747_v24  ;;  %5128 = vmatpush3.bf16.msra.mxu0 %v5125_v29 }
 0x119   :  { %4695 = vmatprep.mubr.msk.f32.mxu1 %vm219_vm0, %v5751_v25  ;;  %4724 = vmatprep.mubr.msk.f32.mxu0 %vm583_vm4, %v127_v33 }
 0x11a   :  { %5130 = vmatprep.subr.bf16.mxu0 %v5129_v34 }
 0x11b   :  { %4725 = vmatmul.mubr.msk.f32.gmra.mrb[4].mxu0 %vm583_vm4, %v128_v35 }
 0x11c   :  { %4696 = vmatmul.mubr.msk.f32.gmra.mrb[4].mxu1 %vm219_vm0, %v5758_v26  ;;  %5132 = vmatpush3.bf16.msra.mxu0 %v5129_v34 }
 0x11d   :  { %4713 = vmatprep.mubr.msk.f32.mxu1 %vm219_vm0, %v5773_v36 }
 0x1e6   :  { %v4708_v39 = vpop.f32.mrb[0].mxu0 }
 0x1e7   :  { %v477_v40 = vpop.f32.mrb[1].mxu0 }
 0x1e8   :  { %v5121_v41 = vpack.c.bf16 %v4708_v39, %v477_v40 }
 0x1ea   :  { %5122 = vmatprep.subr.bf16.mxu1 %v5121_v41 }
 0x1eb   :  { %v5779_v43 = vpop.f32.mrb[2].mxu1  ;;  %5124 = vmatpush3.bf16.msra.mxu1 %v5121_v41 }
 0x1ec   :  { %v5784_v45 = vpop.f32.mrb[3].mxu1  ;;  %5134 = vmatprep.subr.bf16.mxu1 %v5133_v42 }
 0x1ed   :  { %4735 = vmatprep.mubr.msk.f32.mxu0 %vm404_vm3, %v5784_v45 }
 0x1ee   :  { %4736 = vmatmul.mubr.msk.f32.vlgmr.msra.gmra.mrb[2].mxu0 %vm404_vm3, %v5779_v43  ;;  %4714 = vmatmul.mubr.msk.f32.vlgmr.msra.gmra.mrb[6].mxu1 %vm219_vm0, %v5782_v44 }
 0x1ef   :  { %v5792_v46 = vpop.f32.mrb[4].mxu1  ;;  %5136 = vmatpush3.bf16.msra.mxu1 %v5133_v42  ;;  %4716 = vmatprep.mubr.msk.f32.mxu1 %vm219_vm0, %v5805_v50 }
 0x1f0   :  { %v5794_v47 = vpop.f32.mrb[5].mxu1  ;;  %5138 = vmatprep.subr.bf16.mxu1 %v5137_v51 }
 0x1f1   :  { %4738 = vmatprep.mubr.msk.f32.mxu0 %vm404_vm3, %v5794_v47 }
 0x1f2   :  { %4739 = vmatmul.mubr.msk.f32.gmra.mrb[4].mxu0 %vm404_vm3, %v5792_v46  ;;  %4717 = vmatmul.mubr.msk.f32.gmra.mrb[8].mxu1 %vm219_vm0, %v5810_v52 }
 0x1f3   :  { %4770 = vmatprep.mubr.msk.f32.mxu0 %vm219_vm0, %v5773_v36  ;;  %5140 = vmatpush3.bf16.msra.mxu1 %v5137_v51 }
 0x2c1   :  { %v4737_v53 = vpop.f32.mrb[2].mxu0 }
 0x2c2   :  { %v783_v54 = vmul.f32 0.01, %v4737_v53  ;;  %v759_v55 = vpop.f32.mrb[3].mxu0  ;;  %vm779_vm5 = vcmp.gt.f32.partialorder %v4737_v53, 0.0 }
 0x2c3   :  { %vm778_vm6 = vcmp.gt.f32.partialorder %v759_v55, 0.0  ;;  %v782_v56 = vmul.f32 0.01, %v759_v55 }
 0x2c4   :  { %v787_v59 = vsel %vm779_vm5, %v4737_v53, %v783_v54 }
 0x2c5   :  { %v4740_v57 = vpop.f32.mrb[4].mxu0  ;;  %v786_v58 = vsel %vm778_vm6, %v759_v55, %v782_v56 }
 0x2c6   :  { %v785_v60 = vmul.f32 0.01, %v4740_v57  ;;  %v769_v61 = vpop.f32.mrb[5].mxu0  ;;  %4749 = vmatprep.mubr.msk.f32.mxu1 %vm404_vm3, %v786_v58  ;;  %vm781_vm7 = vcmp.gt.f32.partialorder %v4740_v57, 0.0 }
 0x2c7   :  { %vm780_vm8 = vcmp.gt.f32.partialorder %v769_v61, 0.0  ;;  %v784_v62 = vmul.f32 0.01, %v769_v61  ;;  %4750 = vmatmul.mubr.msk.f32.vlgmr.msra.gmra.mrb[6].mxu1 %vm404_vm3, %v787_v59 }
 0x2c8   :  { %v789_v0 = vsel %vm781_vm7, %v4740_v57, %v785_v60  ;;  %v5843_v57 = vld [vmem:[%s5591_s21] sm:$0xff] }
 0x2c9   :  { %v788_v63 = vsel %vm780_vm8, %v769_v61, %v784_v62 }
 0x2ca   :  { %4752 = vmatprep.mubr.msk.f32.mxu1 %vm404_vm3, %v788_v63 }
 0x2cb   :  { %4753 = vmatmul.mubr.msk.f32.gmra.mrb[8].mxu1 %vm404_vm3, %v789_v0 }
 0x2cc   :  { %4763 = vmatprep.mubr.msk.f32.mxu1 %vm404_vm3, %v5843_v57 }
 0x39a   :  { %v4751_v2 = vpop.f32.mrb[6].mxu1 }
 0x39b   :  { %v868_v3 = vpop.f32.mrb[7].mxu1  ;;  %v892_v5 = vmul.f32 0.01, %v4751_v2  ;;  %vm888_vm10 = vcmp.gt.f32.partialorder %v4751_v2, 0.0 }
 0x39c   :  { %v891_v4 = vmul.f32 0.01, %v868_v3  ;;  %vm887_vm9 = vcmp.gt.f32.partialorder %v868_v3, 0.0 }
 0x39d   :  { %v896_v12 = vsel %vm888_vm10, %v4751_v2, %v892_v5 }
 0x39e   :  { %v4754_v6 = vpop.f32.mrb[8].mxu1  ;;  %v895_v7 = vsel %vm887_vm9, %v868_v3, %v891_v4 }
 0x39f   :  { %905 = vperm.xlu0 %5388, %v895_v7   ;;  %v878_v8 = vpop.f32.mrb[9].mxu1  ;;  %v894_v10 = vmul.f32 0.01, %v4754_v6  ;;  %vm890_vm12 = vcmp.gt.f32.partialorder %v4754_v6, 0.0 }
 0x3a0   :  { %v893_v9 = vmul.f32 0.01, %v878_v8  ;;  %vm889_vm11 = vcmp.gt.f32.partialorder %v878_v8, 0.0 }
 0x3a1   :  { %v898_v14 = vsel %vm890_vm12, %v4754_v6, %v894_v10  ;;  %v159_v10 = vld [vmem:[%s5636_s6 + $0x8] sm:$0xff]  ;;  %vm2977_vm12 = vcmask 15360  }
 0x3a2   :  { %v897_v13 = vsel %vm889_vm11, %v878_v8, %v893_v9  ;;  %v158_v9 = vld [vmem:[%s5636_s6] sm:$0xff]  ;;  %vm5560_vm11 = vmmov 0  }
 0x3a3   :  { %910 = vperm.xlu0 %5388, %v896_v12   ;;  %915 = vperm.xlu1 %5389, %v897_v13  }
 0x3a7   :  { %920 = vperm.xlu1 %5389, %v898_v14  }
 0x41e   :  { %v906_v15 = vpop.permute.xlu0 %905 }
 0x41f   :  { %v923_v19 = vsel %vm899_vm14, %v906_v15, -1e+30  ;;  %v5153_v15 = vpack.c.bf16 %v159_v10, %v158_v9  ;;  %v166_v9 = vld [vmem:[%s5646_s20 + $0x18] sm:$0xff] }
 0x420   :  { %v927_v29 = vsel %vm219_vm0, %v923_v19, -inf }
 0x422   :  { %v911_v16 = vpop.permute.xlu0 %910  ;;  %v916_v17 = vpop.permute.xlu1 %915 }
 0x423   :  { %v924_v18 = vsel %vm900_vm13, %v911_v16, -1e+30  ;;  %v925_v22 = vsel %vm901_vm15, %v916_v17, -1e+30  ;;  %v160_v16 = vld [vmem:[%s5636_s6 + $0x10] sm:$0xff]  ;;  %v161_v17 = vld [vmem:[%s5636_s6 + $0x18] sm:$0xff] }
 0x424   :  { %v928_v23 = vsel %vm219_vm0, %v924_v18, -inf  ;;  %v929_v30 = vsel %vm219_vm0, %v925_v22, -inf  ;;  %v5864_v18 = vld [vmem:[%s5591_s21 + $0x8] sm:$0xff]  ;;  %v5157_v19 = vpack.c.bf16 %v161_v17, %v160_v16  ;;  %v167_v22 = vld [vmem:[%s5646_s20 + $0x20] sm:$0xff]  ;;  %s5557_s21 = smov 96   ;;  %s6300_s6 = sld [smem:[#allocation14_spill]] }
 0x425   :  { %v931_v32 = vmax.f32 %v927_v29, %v928_v23  ;;  %v168_v23 = vld [vmem:[%s5646_s20 + $0x28] sm:$0xff]  ;;  %v170_v29 = vld [vmem:[%s5646_s20 + $0x38] sm:$0xff] }
 0x426   :  { %v921_v27 = vpop.permute.xlu1 %920 }
 0x427   :  { %v926_v28 = vsel %vm902_vm1, %v921_v27, -1e+30  ;;  %v5169_v27 = vpack.c.bf16 %v168_v23, %v167_v22 }
 0x428   :  { %v930_v31 = vsel %vm219_vm0, %v926_v28, -inf  ;;  %v169_v28 = vld [vmem:[%s5646_s20 + $0x30] sm:$0xff] }
 0x429   :  { %v932_v33 = vmax.f32 %v929_v30, %v930_v31  ;;  %v5173_v30 = vpack.c.bf16 %v170_v29, %v169_v28 }
 0x42b   :  { %v933_v34 = vmax.f32 %v931_v32, %v932_v33 }
 0x42d   :  { %v934_v35 = vrot.slane %v933_v34, 4 }
 0x42f   :  { %v935_v37 = vmax.f32 %v933_v34, %v934_v35 }
 0x431   :  { %v936_v38 = vrot.slane %v935_v37, 2 }
 0x433   :  { %v937_v39 = vmax.f32 %v935_v37, %v936_v38 }
 0x435   :  { %v938_v40 = vrot.slane %v937_v39, 1 }
 0x437   :  { %v939_v41 = vmax.f32 %v937_v39, %v938_v40 }
 0x439   :  { %v941_v42 = vmul.f32 %v939_v41, %v5782_v44  ;;  %v940_v48 = vmul.f32 %v939_v41, %v5773_v36  ;;  %v942_v53 = vmul.f32 %v939_v41, %v5805_v50  ;;  %v943_v55 = vmul.f32 %v939_v41, %v5810_v52 }
 0x43b   :  { %v947_v49 = vsel %vm219_vm0, %v941_v42, 0.0  ;;  %v944_v51 = vsel %vm219_vm0, %v940_v48, 0.0  ;;  %v950_v54 = vsel %vm219_vm0, %v942_v53, 0.0  ;;  %v953_v56 = vsel %vm219_vm0, %v943_v55, 0.0 }
 0x43c   :  { %948 = vadd.xlane.f32.xlu1 %v947_v49  ;;  %945 = vadd.xlane.f32.xlu0 %v944_v51 }
 0x440   :  { %951 = vadd.xlane.f32.xlu0 %v950_v54 }
 0x444   :  { %954 = vadd.xlane.f32.xlu0 %v953_v56 }
 0x4c9   :  { %v949_v58 = vpop.xlane.xlu1 %948  ;;  %v946_v59 = vpop.xlane.xlu0 %945 }
 0x4ca   :  { %v957_v60 = vsub.f32 %v896_v12, %v949_v58  ;;  %v956_v61 = vsub.f32 %v895_v7, %v946_v59 }
 0x4cc   :  { %v962_v62 = vmul.f32 1.442695, %v957_v60  ;;  %v960_v63 = vmul.f32 1.442695, %v956_v61 }
 0x4cd   :  { %v952_v0 = vpop.xlane.xlu0 %951 }
 0x4ce   :  { %5405 = vpow2.f32 %v962_v62  ;;  %v958_v1 = vsub.f32 %v897_v13, %v952_v0 }
 0x4cf   :  { %5407 = vpow2.f32 %v960_v63 }
 0x4d0   :  { %v964_v2 = vmul.f32 1.442695, %v958_v1 }
 0x4d1   :  { %v955_v3 = vpop.xlane.xlu0 %954 }
 0x4d2   :  { %v959_v4 = vsub.f32 %v898_v14, %v955_v3  ;;  %5409 = vpow2.f32 %v964_v2 }
 0x4d4   :  { %v966_v5 = vmul.f32 1.442695, %v959_v4 }
 0x4d6   :  { %5411 = vpow2.f32 %v966_v5  ;;  %v163_v5 = vld [vmem:[%s5646_s20] sm:$0xff] }
 0x4d8   :  { %v5847_v6 = vpop.eup %5405 }
 0x4d9   :  { %v5849_v7 = vpop.eup %5407 }
 0x4da   :  { %v5141_v8 = vpack.c.bf16 %v5847_v6, %v5849_v7 }
 0x4dc   :  { %5142 = vmatprep.subr.bf16.mxu1 %v5141_v8  ;;  %v5855_v12 = vpop.eup %5409 }
 0x4dd   :  { %5144 = vmatpush3.bf16.msra.mxu1 %v5141_v8  ;;  %v165_v8 = vld [vmem:[%s5646_s20 + $0x10] sm:$0xff] }
 0x4de   :  { %v5181_v10 = vpack.c.bf16 %v166_v9, %v165_v8 }
 0x4e0   :  { %v5857_v13 = vpop.eup %5411 }
 0x4e1   :  { %v5145_v14 = vpack.c.bf16 %v5857_v13, %v5855_v12 }
 0x4e3   :  { %5146 = vmatprep.subr.bf16.mxu1 %v5145_v14 }
 0x4e4   :  { %5148 = vmatpush3.bf16.msra.mxu1 %v5145_v14 }
 0x4e5   :  { %5154 = vmatprep.subr.bf16.mxu1 %v5153_v15 }
 0x4e7   :  { %4764 = vmatmul.mubr.msk.f32.vlgmr.msra.gmra.mrb[10].mxu1 %vm404_vm3, %v5864_v18 }
 0x4e8   :  { %5156 = vmatpush3.bf16.msra.mxu1 %v5153_v15  ;;  %4784 = vmatprep.mubr.msk.f32.mxu1 %vm404_vm3, %v5784_v45 }
 0x4e9   :  { %5158 = vmatprep.subr.bf16.mxu1 %v5157_v19 }
 0x4ec   :  { %5160 = vmatpush3.bf16.msra.mxu1 %v5157_v19 }
 0x4ed   :  { %5170 = vmatprep.subr.bf16.mxu1 %v5169_v27 }
 0x4ef   :  { %4785 = vmatmul.mubr.msk.f32.vlgmr.msra.gmra.mrb[12].mxu1 %vm404_vm3, %v5779_v43 }
 0x4f0   :  { %4787 = vmatprep.mubr.msk.f32.mxu1 %vm404_vm3, %v5794_v47  ;;  %5172 = vmatpush3.bf16.msra.mxu1 %v5169_v27 }
 0x4f1   :  { %5174 = vmatprep.subr.bf16.mxu1 %v5173_v30 }
 0x4f3   :  { %4788 = vmatmul.mubr.msk.f32.gmra.mrb[14].mxu1 %vm404_vm3, %v5792_v46 }
 0x4f4   :  { %5176 = vmatpush3.bf16.msra.mxu1 %v5173_v30  ;;  %4809 = vmatprep.mubr.msk.f32.mxu1 %vm404_vm3, %v5737_v21 }
 0x4f7   :  { %4810 = vmatmul.mubr.msk.f32.vlgmr.msra.gmra.mrb[16].mxu1 %vm404_vm3, %v5735_v20 }
 0x5ba   :  { %v4765_v45 = vpop.f32.mrb[10].mxu1 }
 0x5bb   :  { %v1040_v31 = vpop.f32.mrb[11].mxu1 }
 0x5bc   :  { %v5149_v32 = vpack.c.bf16 %v4765_v45, %v1040_v31 }
 0x5be   :  { %5150 = vmatprep.subr.bf16.mxu0 %v5149_v32 }
 0x5bf   :  { %5152 = vmatpush3.bf16.msra.mxu0 %v5149_v32  ;;  %v4382_v32 = vld [vmem:[%s6292_s0] ss:$0 sm:$0xff] }
 0x5c2   :  { %4771 = vmatmul.mubr.msk.f32.vlgmr.msra.gmra.mrb[6].mxu0 %vm219_vm0, %v5782_v44  ;;  %v4786_v43 = vpop.f32.mrb[12].mxu1 }
 0x5c3   :  { %v1208_v47 = vpop.f32.mrb[13].mxu1  ;;  %4773 = vmatprep.mubr.msk.f32.mxu0 %vm219_vm0, %v5805_v50 }
 0x5c6   :  { %4774 = vmatmul.mubr.msk.f32.gmra.mrb[8].mxu0 %vm219_vm0, %v5810_v52  ;;  %v4789_v46 = vpop.f32.mrb[14].mxu1 }
 0x5c7   :  { %v1218_v33 = vpop.f32.mrb[15].mxu1  ;;  %4798 = vmatprep.mubr.msk.f32.mxu0 %vm404_vm3, %v5843_v57 }
 0x695   :  { %v4772_v34 = vpop.f32.mrb[6].mxu0 }
 0x696   :  { %v1121_v35 = vadd.f32 1e-16, %v4772_v34  ;;  %v1115_v37 = vpop.f32.mrb[7].mxu0 }
 0x697   :  { %v1116_v38 = vadd.f32 1e-16, %v1115_v37 }
 0x698   :  { %5413 = vrcp.f32 %v1121_v35 }
 0x699   :  { %5415 = vrcp.f32 %v1116_v38  ;;  %v4775_v39 = vpop.f32.mrb[8].mxu0 }
 0x69a   :  { %v1125_v40 = vpop.f32.mrb[9].mxu0  ;;  %v1131_v41 = vadd.f32 1e-16, %v4775_v39 }
 0x69b   :  { %v1126_v42 = vadd.f32 1e-16, %v1125_v40 }
 0x69d   :  { %5417 = vrcp.f32 %v1126_v42 }
 0x69e   :  { %5419 = vrcp.f32 %v1131_v41 }
 0x6a2   :  { %v5414_v48 = vpop.eup %5413 }
 0x6a3   :  { %v5416_v49 = vpop.eup %5415  ;;  %v1137_v51 = vmul.f32 %v5414_v48, %v5847_v6  ;;  %v164_v6 = vld [vmem:[%s5646_s20 + $0x8] sm:$0xff]  ;;  %s6302_s20 = sld [smem:[#allocation16_spill]] }
 0x6a4   :  { %v1135_v53 = vmul.f32 %v5416_v49, %v5849_v7  ;;  %v5177_v7 = vpack.c.bf16 %v164_v6, %v163_v5 }
 0x6a5   :  { %1234 = vperm.xlu0 %5388, %v1137_v51  }
 0x6a6   :  { %1229 = vperm.xlu1 %5389, %v1135_v53   ;;  %5178 = vmatprep.subr.bf16.mxu1 %v5177_v7 }
 0x6a7   :  { %v5418_v54 = vpop.eup %5417  ;;  %5180 = vmatpush3.bf16.msra.mxu1 %v5177_v7 }
 0x6a8   :  { %v1139_v55 = vmul.f32 %v5418_v54, %v5855_v12  ;;  %v5420_v56 = vpop.eup %5419  ;;  %5182 = vmatprep.subr.bf16.mxu1 %v5181_v10  ;;  %v4373_v12 = vld [vmem:[%s5641_s12] ss:$0 sm:$0xff]  ;;  %s6301_s12 = sld [smem:[#allocation5_spill]] }
 0x6a9   :  { %v1141_v58 = vmul.f32 %v5420_v56, %v5857_v13 }
 0x6aa   :  { %1239 = vperm.xlu1 %5389, %v1139_v55  }
 0x6ab   :  { %5184 = vmatpush3.bf16.msra.mxu1 %v5181_v10 }
 0x6ae   :  { %1244 = vperm.xlu1 %5389, %v1141_v58  }
 0x724   :  { %v1235_v59 = vpop.permute.xlu0 %1234 }
 0x725   :  { %v1248_v60 = vmul.f32 %v4786_v43, %v1235_v59  ;;  %v1230_v61 = vpop.permute.xlu1 %1229  ;;  %v172_v59 = vld [vmem:[%s6293_s9] sm:$0xff] }
 0x726   :  { %v1247_v62 = vmul.f32 %v1230_v61, %v1208_v47 }
 0x728   :  { %v5161_v63 = vpack.c.bf16 %v1248_v60, %v1247_v62  ;;  %v173_v60 = vld [vmem:[%s6293_s9 + $0x8] sm:$0xff] }
 0x729   :  { %v1240_v0 = vpop.permute.xlu1 %1239  ;;  %v5185_v61 = vpack.c.bf16 %v173_v60, %v172_v59 }
 0x72a   :  { %5162 = vmatprep.subr.bf16.mxu0 %v5161_v63  ;;  %v1249_v2 = vmul.f32 %v1240_v0, %v1218_v33 }
 0x72b   :  { %5164 = vmatpush3.bf16.msra.mxu0 %v5161_v63  ;;  %v175_v63 = vld [vmem:[%s6293_s9 + $0x18] sm:$0xff] }
 0x72d   :  { %v1245_v1 = vpop.permute.xlu1 %1244 }
 0x72e   :  { %v1250_v3 = vmul.f32 %v4789_v46, %v1245_v1 }
 0x730   :  { %v5165_v4 = vpack.c.bf16 %v1250_v3, %v1249_v2  ;;  %v176_v2 = vld [vmem:[%s6294_s17] sm:$0xff]  ;;  %v177_v3 = vld [vmem:[%s6294_s17 + $0x8] sm:$0xff] }
 0x731   :  { %v5193_v5 = vpack.c.bf16 %v177_v3, %v176_v2 }
 0x732   :  { %5166 = vmatprep.subr.bf16.mxu0 %v5165_v4 }
 0x733   :  { %5168 = vmatpush3.bf16.msra.mxu0 %v5165_v4 }
 0x734   :  { %5186 = vmatprep.subr.bf16.mxu0 %v5185_v61 }
 0x736   :  { %4799 = vmatmul.mubr.msk.f32.vlgmr.msra.gmra.mrb[10].mxu0 %vm404_vm3, %v5864_v18 }
 0x737   :  { %5188 = vmatpush3.bf16.msra.mxu0 %v5185_v61 }
 0x809   :  { %v4800_v13 = vpop.f32.mrb[10].mxu0 }
 0x80a   :  { %v1329_v14 = vadd.f32 %v4800_v13, %v4373_v12  ;;  %v1323_v15 = vpop.f32.mrb[11].mxu0 }
 0x80b   :  { %v1324_v16 = vadd.f32 %v4373_v12, %v1323_v15 }
 0x80c   :  { %v1335_v17 = vmin.f32 %v1329_v14, 0.0  ;;  %vm1333_vm4 = vcmp.gt.f32.partialorder %v1329_v14, 0.0 }
 0x80d   :  { %v1334_v19 = vmin.f32 %v1324_v16, 0.0  ;;  %vm1332_vm2 = vcmp.gt.f32.partialorder %v1324_v16, 0.0 }
 0x80e   :  { %v1338_v22 = vmul.f32 1.442695, %v1335_v17 }
 0x80f   :  { %v1336_v23 = vmul.f32 1.442695, %v1334_v19 }
 0x810   :  { %5421 = vpow2.f32 %v1338_v22 }
 0x811   :  { %5423 = vpow2.f32 %v1336_v23  ;;  %v178_v23 = vld [vmem:[%s6294_s17 + $0x10] sm:$0xff] }
 0x81a   :  { %v5422_v27 = vpop.eup %5421 }
 0x81b   :  { %v5424_v28 = vpop.eup %5423  ;;  %v4377_v29 = vadd.f32 -1.0, %v5422_v27  ;;  %v179_v27 = vld [vmem:[%s6294_s17 + $0x18] sm:$0xff] }
 0x81c   :  { %v4376_v30 = vadd.f32 -1.0, %v5424_v28  ;;  %v5197_v28 = vpack.c.bf16 %v179_v27, %v178_v23 }
 0x81d   :  { %v1343_v31 = vsel %vm1333_vm4, %v1329_v14, %v4377_v29 }
 0x81e   :  { %v1342_v45 = vsel %vm1332_vm2, %v1324_v16, %v4376_v30 }
 0x81f   :  { %4820 = vmatprep.mubr.msk.f32.mxu1 %vm404_vm3, %v1342_v45 }
 0x820   :  { %4821 = vmatmul.mubr.msk.f32.vlgmr.msra.gmra.mrb[16].mxu1 %vm404_vm3, %v1343_v31 }
 0x821   :  { %4849 = vmatprep.mubr.msk.f32.mxu1 %vm219_vm0, %v5773_v36 }
 0x8f3   :  { %v4822_v43 = vpop.f32.mrb[16].mxu1 }
 0x8f4   :  { %v1507_v47 = vadd.f32 %v4822_v43, %v4382_v32  ;;  %v1491_v46 = vpop.f32.mrb[17].mxu1 }
 0x8f5   :  { %v1506_v33 = vadd.f32 %v4382_v32, %v1491_v46 }
 0x8f6   :  { %1524 = vrot.lane.b32.xlu1 %v1507_v47, %s5555_s5  ;;  %v4384_v34 = vmul.f32 -1.442695, %v1507_v47 }
 0x8f7   :  { %1522 = vrot.lane.b32.xlu0 %v1506_v33, %s5555_s5  ;;  %v4383_v35 = vmul.f32 -1.442695, %v1506_v33 }
 0x8f8   :  { %5425 = vpow2.f32 %v4384_v34 }
 0x8f9   :  { %5427 = vpow2.f32 %v4383_v35 }
 0x902   :  { %v5426_v37 = vpop.eup %5425 }
 0x903   :  { %v5428_v38 = vpop.eup %5427  ;;  %v1515_v39 = vadd.f32 1.0, %v5426_v37 }
 0x904   :  { %v1514_v40 = vadd.f32 1.0, %v5428_v38  ;;  %v185_v38 = vld [vmem:[%s6295_s3 + $0x20] sm:$0xff] }
 0x905   :  { %5429 = vrcp.f32 %v1515_v39  ;;  %v186_v39 = vld [vmem:[%s6295_s3 + $0x28] sm:$0xff] }
 0x906   :  { %5431 = vrcp.f32 %v1514_v40  ;;  %v5233_v40 = vpack.c.bf16 %v186_v39, %v185_v38 }
 0x90f   :  { %v5430_v41 = vpop.eup %5429 }
 0x910   :  { %v5432_v48 = vpop.eup %5431  ;;  %v1543_v12 = vsub.f32 1.0, %v5430_v41 }
 0x911   :  { %v1542_v4 = vsub.f32 1.0, %v5432_v48 }
 0x968   :  { %v1525_v42 = vpop.permute.xlu1 %1524 }
 0x969   :  { %v1529_v49 = vmul.f32 %v5430_v41, %v1525_v42  ;;  %v1523_v51 = vpop.permute.xlu0 %1522  ;;  %v188_v42 = vld [vmem:[%s6295_s3 + $0x38] sm:$0xff] }
 0x96a   :  { %v1528_v53 = vmul.f32 %v5432_v48, %v1523_v51 }
 0x96b   :  { %1534 = vrot.lane.b32.xlu1 %v1529_v49, %s5556_s13 }
 0x96c   :  { %1532 = vrot.lane.b32.xlu0 %v1528_v53, %s5556_s13 }
 0x96f   :  { %1554 = vrot.lane.b32.xlu1 %v5737_v21, %s5555_s5  ;;  %v174_v21 = vld [vmem:[%s6293_s9 + $0x10] sm:$0xff] }
 0x970   :  { %v5189_v0 = vpack.c.bf16 %v175_v63, %v174_v21 }
 0x972   :  { %5190 = vmatprep.subr.bf16.mxu0 %v5189_v0 }
 0x973   :  { %1556 = vrot.lane.b32.xlu1 %v5735_v20, %s5555_s5  ;;  %5192 = vmatpush3.bf16.msra.mxu0 %v5189_v0 }
 0x974   :  { %5194 = vmatprep.subr.bf16.mxu0 %v5193_v5 }
 0x9dd   :  { %v1535_v54 = vpop.permute.xlu1 %1534 }
 0x9de   :  { %v1533_v55 = vpop.permute.xlu0 %1532  ;;  %v1539_v58 = vadd.f32 %v1535_v54, %v1507_v47 }
 0x9df   :  { %v1538_v56 = vadd.f32 %v1533_v55, %v1506_v33 }
 0x9e1   :  { %5433 = vtanh.f32 %v1538_v56  ;;  %v1555_v1 = vpop.permute.xlu1 %1554 }
 0x9e2   :  { %5435 = vtanh.f32 %v1539_v58  ;;  %v1560_v7 = vmul.f32 %v5432_v48, %v1555_v1 }
 0x9e5   :  { %v1557_v9 = vpop.permute.xlu1 %1556 }
 0x9e6   :  { %v1561_v14 = vmul.f32 %v5430_v41, %v1557_v9  ;;  %v187_v41 = vld [vmem:[%s6295_s3 + $0x30] sm:$0xff] }
 0x9e7   :  { %v5237_v48 = vpack.c.bf16 %v188_v42, %v187_v41 }
 0x9eb   :  { %v5434_v62 = vpop.eup %5433 }
 0x9ec   :  { %1546 = vrot.lane.b32.xlu0 %v5434_v62, %s5557_s21  ;;  %v5436_v20 = vpop.eup %5435 }
 0x9f0   :  { %1548 = vrot.lane.b32.xlu0 %v5436_v20, %s5557_s21 }
 0xa5e   :  { %v1547_v6 = vpop.permute.xlu0 %1546 }
 0xa5f   :  { %v1552_v8 = vmul.f32 %v1547_v6, %v1542_v4 }
 0xa61   :  { %v5924_v10 = vadd.f32 %v1560_v7, %v1552_v8 }
 0xa62   :  { %v1549_v13 = vpop.permute.xlu0 %1548 }
 0xa63   :  { %v1564_v15 = vmax.f32 %v5924_v10, 0.0  ;;  %v1553_v16 = vmul.f32 %v1549_v13, %v1543_v12 }
 0xa65   :  { %v5927_v17 = vadd.f32 %v1561_v14, %v1553_v16  ;;  %1568 = vrot.lane.b32.xlu0 %v1564_v15, %s5557_s21 }
 0xa67   :  { %v1565_v19 = vmax.f32 %v5927_v17, 0.0 }
 0xa69   :  { %1570 = vrot.lane.b32.xlu1 %v1565_v19, %s5557_s21 }
 0xad7   :  { %v1569_v22 = vpop.permute.xlu0 %1568 }
 0xad8   :  { %4831 = vmatprep.mubr.msk.f32.mxu0 %vm404_vm3, %v1569_v22 }
 0xadb   :  { %v1571_v29 = vpop.permute.xlu1 %1570 }
 0xadc   :  { %4832 = vmatmul.mubr.msk.f32.vlgmr.msra.gmra.mrb[12].mxu0 %vm404_vm3, %v1571_v29 }
 0xadd   :  { %5196 = vmatpush3.bf16.msra.mxu0 %v5193_v5 }
 0xade   :  { %5198 = vmatprep.subr.bf16.mxu0 %v5197_v28 }
 0xae1   :  { %5200 = vmatpush3.bf16.msra.mxu0 %v5197_v28 }
 0xbaf   :  { %v4833_v30 = vpop.f32.mrb[12].mxu0 }
 0xbb0   :  { %v1642_v45 = vpop.f32.mrb[13].mxu0 }
 0xbb1   :  { %v5221_v31 = vpack.c.bf16 %v4833_v30, %v1642_v45  ;;  %4842 = vmatprep.mubr.msk.f32.mxu0 %vm404_vm3, %v1642_v45 }
 0xbb2   :  { %4843 = vmatmul.mubr.msk.f32.vlgmr.msra.gmra.mrb[14].mxu0 %vm404_vm3, %v4833_v30 }
 0xbb3   :  { %4873 = vmatprep.mubr.msk.f32.mxu0 %vm404_vm3, %v5843_v57 }
 0xc85   :  { %v4844_v32 = vpop.f32.mrb[14].mxu0 }
 0xc86   :  { %v1723_v43 = vpop.f32.mrb[15].mxu0 }
 0xc87   :  { %v5390_v47 = vpack.i.bf16 %v4844_v32, %v1723_v43  ;;  %v5205_v46 = vpack.c.bf16 %v4844_v32, %v1723_v43 }
 0xc89   :  { %5391 = vrot.lane.b32.xlu0 %v5390_v47, %s5558_s8 }
 0xcfb   :  { %v5392_v33 = vpop.permute.xlu0 %5391 }
 0xcfc   :  { %v5394_v34 = vunpack.i.h.bf16 %v5392_v33  ;;  %v5393_v35 = vunpack.i.l.bf16 %v5392_v33 }
 0xcfe   :  { %v5201_v37 = vpack.c.bf16 %v5394_v34, %v5393_v35 }
 0xd00   :  { %5202 = vmatprep.subr.bf16.mxu1 %v5201_v37 }
 0xd01   :  { %5204 = vmatpush3.bf16.msra.mxu1 %v5201_v37 }
 0xd02   :  { %5206 = vmatprep.subr.bf16.mxu1 %v5205_v46 }
 0xd04   :  { %4850 = vmatmul.mubr.msk.f32.vlgmr.msra.gmra.mrb[18].mxu1 %vm219_vm0, %v5782_v44 }
 0xd05   :  { %5208 = vmatpush3.bf16.msra.mxu1 %v5205_v46  ;;  %4852 = vmatprep.mubr.msk.f32.mxu1 %vm219_vm0, %v5805_v50 }
 0xd06   :  { %5222 = vmatprep.subr.bf16.mxu1 %v5221_v31 }
 0xd08   :  { %4853 = vmatmul.mubr.msk.f32.gmra.mrb[20].mxu1 %vm219_vm0, %v5810_v52 }
 0xd09   :  { %4859 = vmatprep.mubr.msk.f32.mxu1 %vm219_vm0, %v5729_v11 }
 0xd0c   :  { %4860 = vmatmul.mubr.msk.f32.vlgmr.msra.gmra.mrb[18].mxu1 %vm219_vm0, %v5747_v24 }
 0xd0d   :  { %5224 = vmatpush3.bf16.msra.mxu1 %v5221_v31  ;;  %4862 = vmatprep.mubr.msk.f32.mxu1 %vm219_vm0, %v5751_v25 }
 0xd0e   :  { %5234 = vmatprep.subr.bf16.mxu1 %v5233_v40 }
 0xd10   :  { %4863 = vmatmul.mubr.msk.f32.gmra.mrb[20].mxu1 %vm219_vm0, %v5758_v26 }
 0xd11   :  { %4890 = vmatprep.mubr.msk.f32.mxu1 %vm219_vm0, %v5729_v11 }
 0xd14   :  { %4891 = vmatmul.mubr.msk.f32.vlgmr.msra.gmra.mrb[22].mxu1 %vm219_vm0, %v5747_v24 }
 0xd15   :  { %5236 = vmatpush3.bf16.msra.mxu1 %v5233_v40  ;;  %4893 = vmatprep.mubr.msk.f32.mxu1 %vm219_vm0, %v5751_v25 }
 0xd16   :  { %5238 = vmatprep.subr.bf16.mxu1 %v5237_v48 }
 0xd18   :  { %4894 = vmatmul.mubr.msk.f32.gmra.mrb[24].mxu1 %vm219_vm0, %v5758_v26 }
 0xd19   :  { %5240 = vmatpush3.bf16.msra.mxu1 %v5237_v48  ;;  %4915 = vmatprep.mubr.msk.f32.mxu1 %vm404_vm3, %v1569_v22 }
 0xd1c   :  { %4916 = vmatmul.mubr.msk.f32.vlgmr.msra.gmra.mrb[26].mxu1 %vm404_vm3, %v1571_v29 }
 0xddf   :  { %v4861_v49 = vpop.f32.mrb[18].mxu1 }
 0xde0   :  { %vm1911_vm5 = vcmp.gt.f32.partialorder %v4861_v49, 0.0  ;;  %v1915_v11 = vmul.f32 0.01, %v4861_v49  ;;  %v1891_v51 = vpop.f32.mrb[19].mxu1 }
 0xde1   :  { %vm1910_vm6 = vcmp.gt.f32.partialorder %v1891_v51, 0.0  ;;  %v1914_v53 = vmul.f32 0.01, %v1891_v51 }
 0xde2   :  { %v1919_v24 = vsel %vm1911_vm5, %v4861_v49, %v1915_v11 }
 0xde3   :  { %1929 = vperm.xlu0 %5388, %v1919_v24   ;;  %v4864_v54 = vpop.f32.mrb[20].mxu1  ;;  %v1918_v55 = vsel %vm1910_vm6, %v1891_v51, %v1914_v53 }
 0xde4   :  { %vm1913_vm7 = vcmp.gt.f32.partialorder %v4864_v54, 0.0  ;;  %v1917_v25 = vmul.f32 0.01, %v4864_v54  ;;  %1924 = vperm.xlu1 %5389, %v1918_v55   ;;  %v1901_v56 = vpop.f32.mrb[21].mxu1 }
 0xde5   :  { %vm1912_vm8 = vcmp.gt.f32.partialorder %v1901_v56, 0.0  ;;  %v1916_v26 = vmul.f32 0.01, %v1901_v56 }
 0xde6   :  { %v1921_v58 = vsel %vm1913_vm7, %v4864_v54, %v1917_v25 }
 0xde7   :  { %1939 = vperm.xlu0 %5388, %v1921_v58   ;;  %v1920_v59 = vsel %vm1912_vm8, %v1901_v56, %v1916_v26  ;;  %v4892_v56 = vpop.f32.mrb[22].mxu1 }
 0xde8   :  { %1934 = vperm.xlu1 %5389, %v1920_v59  }
 0xe62   :  { %v1930_v60 = vpop.permute.xlu0 %1929 }
 0xe63   :  { %v1925_v61 = vpop.permute.xlu1 %1924  ;;  %v1943_v62 = vsel %vm900_vm13, %v1930_v60, -1e+30  ;;  %vm2984_vm13 = vcmask 1041408  }
 0xe64   :  { %v1942_v20 = vsel %vm899_vm14, %v1925_v61, -1e+30  ;;  %v1947_v63 = vsel %vm219_vm0, %v1943_v62, -inf }
 0xe65   :  { %v1946_v0 = vsel %vm219_vm0, %v1942_v20, -inf }
 0xe66   :  { %v1940_v21 = vpop.permute.xlu0 %1939  ;;  %v1950_v6 = vmax.f32 %v1946_v0, %v1947_v63  ;;  %v2221_v63 = vpop.f32.mrb[23].mxu1 }
 0xe67   :  { %v1945_v1 = vsel %vm902_vm1, %v1940_v21, -1e+30  ;;  %v1935_v2 = vpop.permute.xlu1 %1934 }
 0xe68   :  { %v1949_v3 = vsel %vm219_vm0, %v1945_v1, -inf  ;;  %v1944_v4 = vsel %vm901_vm15, %v1935_v2, -1e+30  ;;  %v4895_v2 = vpop.f32.mrb[24].mxu1 }
 0xe69   :  { %v1948_v5 = vsel %vm219_vm0, %v1944_v4, -inf  ;;  %v2231_v4 = vpop.f32.mrb[25].mxu1 }
 0xe6a   :  { %v1951_v7 = vmax.f32 %v1948_v5, %v1949_v3 }
 0xe6c   :  { %v1952_v8 = vmax.f32 %v1950_v6, %v1951_v7 }
 0xe6e   :  { %v1953_v9 = vrot.slane %v1952_v8, 4 }
 0xe70   :  { %v1954_v12 = vmax.f32 %v1952_v8, %v1953_v9 }
 0xe72   :  { %v1955_v13 = vrot.slane %v1954_v12, 2 }
 0xe74   :  { %v1956_v14 = vmax.f32 %v1954_v12, %v1955_v13 }
 0xe76   :  { %v1957_v16 = vrot.slane %v1956_v14, 1 }
 0xe78   :  { %v1958_v22 = vmax.f32 %v1956_v14, %v1957_v16 }
 0xe7a   :  { %v1960_v23 = vmul.f32 %v1958_v22, %v5782_v44  ;;  %v1959_v27 = vmul.f32 %v1958_v22, %v5773_v36  ;;  %v1961_v30 = vmul.f32 %v1958_v22, %v5805_v50  ;;  %v1962_v45 = vmul.f32 %v1958_v22, %v5810_v52 }
 0xe7c   :  { %v1966_v28 = vsel %vm219_vm0, %v1960_v23, 0.0  ;;  %v1963_v29 = vsel %vm219_vm0, %v1959_v27, 0.0  ;;  %v1969_v31 = vsel %vm219_vm0, %v1961_v30, 0.0  ;;  %v1972_v32 = vsel %vm219_vm0, %v1962_v45, 0.0  ;;  %v181_v23 = vld [vmem:[%s6295_s3] sm:$0xff]  ;;  %v182_v27 = vld [vmem:[%s6295_s3 + $0x8] sm:$0xff] }
 0xe7d   :  { %1967 = vadd.xlane.f32.xlu0 %v1966_v28  ;;  %1964 = vadd.xlane.f32.xlu1 %v1963_v29  ;;  %v5241_v28 = vpack.c.bf16 %v182_v27, %v181_v23  ;;  %v183_v29 = vld [vmem:[%s6295_s3 + $0x10] sm:$0xff]  ;;  %v184_v30 = vld [vmem:[%s6295_s3 + $0x18] sm:$0xff] }
 0xe7e   :  { %v5245_v45 = vpack.c.bf16 %v184_v30, %v183_v29  ;;  %v194_v30 = vld [vmem:[%s6300_s6] sm:$0xff] }
 0xe7f   :  { %5242 = vmatprep.subr.bf16.mxu1 %v5241_v28 }
 0xe80   :  { %5244 = vmatpush3.bf16.msra.mxu1 %v5241_v28 }
 0xe81   :  { %1970 = vadd.xlane.f32.xlu0 %v1969_v31  ;;  %1973 = vadd.xlane.f32.xlu1 %v1972_v32  ;;  %v4407_v31 = vld [vmem:[%s6296_s14] ss:$0 sm:$0xff] }
 0xe82   :  { %5246 = vmatprep.subr.bf16.mxu1 %v5245_v45 }
 0xe84   :  { %5248 = vmatpush3.bf16.msra.mxu1 %v5245_v45  ;;  %v195_v45 = vld [vmem:[%s6300_s6 + $0x8] sm:$0xff] }
 0xf0a   :  { %v1968_v43 = vpop.xlane.xlu0 %1967  ;;  %v1965_v47 = vpop.xlane.xlu1 %1964 }
 0xf0b   :  { %v1976_v46 = vsub.f32 %v1919_v24, %v1968_v43  ;;  %v1975_v33 = vsub.f32 %v1918_v55, %v1965_v47 }
 0xf0d   :  { %v1981_v34 = vmul.f32 1.442695, %v1976_v46  ;;  %v1979_v35 = vmul.f32 1.442695, %v1975_v33 }
 0xf0e   :  { %v1971_v37 = vpop.xlane.xlu0 %1970  ;;  %v1974_v38 = vpop.xlane.xlu1 %1973 }
 0xf0f   :  { %5437 = vpow2.f32 %v1981_v34  ;;  %v1977_v39 = vsub.f32 %v1920_v59, %v1971_v37  ;;  %v1978_v40 = vsub.f32 %v1921_v58, %v1974_v38 }
 0xf10   :  { %5439 = vpow2.f32 %v1979_v35 }
 0xf11   :  { %v1983_v41 = vmul.f32 1.442695, %v1977_v39  ;;  %v1985_v42 = vmul.f32 1.442695, %v1978_v40 }
 0xf13   :  { %5441 = vpow2.f32 %v1983_v41 }
 0xf14   :  { %5443 = vpow2.f32 %v1985_v42 }
 0xf19   :  { %v5438_v48 = vpop.eup %5437 }
 0xf1a   :  { %v5440_v49 = vpop.eup %5439 }
 0xf1b   :  { %v5209_v11 = vpack.c.bf16 %v5438_v48, %v5440_v49 }
 0xf1d   :  { %v5442_v51 = vpop.eup %5441  ;;  %5210 = vmatprep.subr.bf16.mxu0 %v5209_v11 }
 0xf1e   :  { %v5444_v53 = vpop.eup %5443  ;;  %5212 = vmatpush3.bf16.msra.mxu0 %v5209_v11 }
 0xf1f   :  { %v5213_v24 = vpack.c.bf16 %v5444_v53, %v5442_v51 }
 0xf21   :  { %5214 = vmatprep.subr.bf16.mxu0 %v5213_v24 }
 0xf22   :  { %5216 = vmatpush3.bf16.msra.mxu0 %v5213_v24 }
 0xf25   :  { %4874 = vmatmul.mubr.msk.f32.vlgmr.msra.gmra.mrb[16].mxu0 %vm404_vm3, %v5864_v18 }
 0xf26   :  { %4880 = vmatprep.mubr.msk.f32.mxu0 %vm219_vm0, %v5773_v36 }
 0xff8   :  { %v4875_v54 = vpop.f32.mrb[16].mxu0 }
 0xff9   :  { %v2053_v55 = vpop.f32.mrb[17].mxu0 }
 0xffa   :  { %v5217_v25 = vpack.c.bf16 %v4875_v54, %v2053_v55 }
 0xffc   :  { %5218 = vmatprep.subr.bf16.mxu0 %v5217_v25 }
 0xffd   :  { %5220 = vmatpush3.bf16.msra.mxu0 %v5217_v25 }
0x1000   :  { %4881 = vmatmul.mubr.msk.f32.vlgmr.msra.gmra.mrb[18].mxu0 %vm219_vm0, %v5782_v44 }
0x1001   :  { %4883 = vmatprep.mubr.msk.f32.mxu0 %vm219_vm0, %v5805_v50 }
0x1004   :  { %4884 = vmatmul.mubr.msk.f32.gmra.mrb[20].mxu0 %vm219_vm0, %v5810_v52 }
0x1005   :  { %4904 = vmatprep.mubr.msk.f32.mxu0 %vm404_vm3, %v5843_v57 }
0x10d3   :  { %v4882_v26 = vpop.f32.mrb[18].mxu0 }
0x10d4   :  { %v2134_v36 = vadd.f32 1e-16, %v4882_v26  ;;  %v2128_v58 = vpop.f32.mrb[19].mxu0 }
0x10d5   :  { %v2129_v59 = vadd.f32 1e-16, %v2128_v58 }
0x10d6   :  { %5445 = vrcp.f32 %v2134_v36 }
0x10d7   :  { %5447 = vrcp.f32 %v2129_v59  ;;  %v4885_v60 = vpop.f32.mrb[20].mxu0 }
0x10d8   :  { %v2144_v61 = vadd.f32 1e-16, %v4885_v60  ;;  %v2138_v62 = vpop.f32.mrb[21].mxu0 }
0x10d9   :  { %v2139_v44 = vadd.f32 1e-16, %v2138_v62 }
0x10da   :  { %5449 = vrcp.f32 %v2144_v61 }
0x10db   :  { %5451 = vrcp.f32 %v2139_v44 }
0x10e0   :  { %v5446_v50 = vpop.eup %5445 }
0x10e1   :  { %v5448_v20 = vpop.eup %5447  ;;  %v2150_v21 = vmul.f32 %v5446_v50, %v5438_v48  ;;  %v4416_v48 = vld [vmem:[%s6297_s19] ss:$0 sm:$0xff] }
0x10e2   :  { %v2148_v52 = vmul.f32 %v5448_v20, %v5440_v49 }
0x10e3   :  { %2247 = vperm.xlu1 %5389, %v2150_v21  }
0x10e4   :  { %v5450_v57 = vpop.eup %5449  ;;  %2242 = vperm.xlu0 %5388, %v2148_v52  }
0x10e5   :  { %v5452_v0 = vpop.eup %5451  ;;  %v2154_v1 = vmul.f32 %v5450_v57, %v5444_v53  ;;  %v5559_v57 = vmov 0.0|0.0  }
0x10e6   :  { %v2152_v3 = vmul.f32 %v5452_v0, %v5442_v51  ;;  %5268 = vmatprep.subr.bf16.mxu1 %v5559_v57  ;;  %v190_v0 = vld [vmem:[%s6298_s24] sm:$0xff] }
0x10e8   :  { %2252 = vperm.xlu1 %5389, %v2152_v3   ;;  %2257 = vperm.xlu0 %5388, %v2154_v1   ;;  %v191_v1 = vld [vmem:[%s6298_s24 + $0x8] sm:$0xff] }
0x10e9   :  { %v6027_v3 = vpack.c.bf16 %v191_v1, %v190_v0 }
0x1162   :  { %v2248_v5 = vpop.permute.xlu1 %2247 }
0x1163   :  { %v2261_v6 = vmul.f32 %v4892_v56, %v2248_v5  ;;  %v2243_v7 = vpop.permute.xlu0 %2242 }
0x1164   :  { %v2260_v8 = vmul.f32 %v2243_v7, %v2221_v63 }
0x1166   :  { %v5225_v9 = vpack.c.bf16 %v2261_v6, %v2260_v8 }
0x1167   :  { %v2253_v12 = vpop.permute.xlu1 %2252  ;;  %v2258_v13 = vpop.permute.xlu0 %2257 }
0x1168   :  { %v2262_v14 = vmul.f32 %v2253_v12, %v2231_v4  ;;  %v2263_v16 = vmul.f32 %v4895_v2, %v2258_v13  ;;  %5226 = vmatprep.subr.bf16.mxu0 %v5225_v9  ;;  %v5561_v2 = vmov 0.0   ;;  %v192_v12 = vld [vmem:[%s6298_s24 + $0x10] sm:$0xff]  ;;  %v193_v13 = vld [vmem:[%s6298_s24 + $0x18] sm:$0xff] }
0x1169   :  { %5228 = vmatpush3.bf16.msra.mxu0 %v5225_v9 }
0x116a   :  { %v5229_v22 = vpack.c.bf16 %v2263_v16, %v2262_v14 }
0x116c   :  { %5230 = vmatprep.subr.bf16.mxu0 %v5229_v22 }
0x116d   :  { %5232 = vmatpush3.bf16.msra.mxu0 %v5229_v22  ;;  %v6039_v22 = vpack.c.bf16 %v193_v13, %v192_v12 }
0x116e   :  { %5249 = vmatprep.subr.bf16.mxu0 %v5559_v57 }
0x1170   :  { %4905 = vmatmul.mubr.msk.f32.vlgmr.msra.gmra.mrb[22].mxu0 %vm404_vm3, %v5864_v18 }
0x1171   :  { %4933 = vmatprep.mubr.msk.f32.mxu0 %vm5560_vm11, %v5561_v2 }
0x1243   :  { %v4906_v32 = vpop.f32.mrb[22].mxu0 }
0x1244   :  { %v2342_v43 = vadd.f32 %v4906_v32, %v4407_v31  ;;  %v2336_v47 = vpop.f32.mrb[23].mxu0  ;;  %v196_v32 = vld [vmem:[%s6300_s6 + $0x10] sm:$0xff] }
0x1245   :  { %v2337_v46 = vadd.f32 %v4407_v31, %v2336_v47  ;;  %v5260_v31 = vpack.c.bf16 %v195_v45, %v194_v30 }
0x1246   :  { %v2348_v33 = vmin.f32 %v2342_v43, 0.0  ;;  %vm2346_vm10 = vcmp.gt.f32.partialorder %v2342_v43, 0.0 }
0x1247   :  { %v2347_v34 = vmin.f32 %v2337_v46, 0.0  ;;  %vm2345_vm9 = vcmp.gt.f32.partialorder %v2337_v46, 0.0 }
0x1248   :  { %v2351_v35 = vmul.f32 1.442695, %v2348_v33 }
0x1249   :  { %v2349_v18 = vmul.f32 1.442695, %v2347_v34 }
0x124a   :  { %5453 = vpow2.f32 %v2351_v35 }
0x124b   :  { %5455 = vpow2.f32 %v2349_v18 }
0x1254   :  { %v5454_v37 = vpop.eup %5453 }
0x1255   :  { %v5456_v38 = vpop.eup %5455  ;;  %v4411_v39 = vadd.f32 -1.0, %v5454_v37 }
0x1256   :  { %v4410_v40 = vadd.f32 -1.0, %v5456_v38 }
0x1257   :  { %v2356_v42 = vsel %vm2346_vm10, %v2342_v43, %v4411_v39  ;;  %v197_v43 = vld [vmem:[%s6300_s6 + $0x18] sm:$0xff] }
0x1258   :  { %v2355_v41 = vsel %vm2345_vm9, %v2337_v46, %v4410_v40  ;;  %v5264_v47 = vpack.c.bf16 %v197_v43, %v196_v32  ;;  %v5395_v46 = vpack.i.bf16 %v195_v45, %v194_v30  ;;  %v5400_v33 = vpack.i.bf16 %v197_v43, %v196_v32  ;;  %v203_v43 = vld [vmem:[%s6302_s20 + $0x20] sm:$0xff] }
0x1259   :  { %4926 = vmatprep.mubr.msk.f32.mxu1 %vm404_vm3, %v2355_v41 }
0x125a   :  { %4927 = vmatmul.mubr.msk.f32.vlgmr.msra.gmra.mrb[26].mxu1 %vm404_vm3, %v2356_v42 }
0x125b   :  { %4966 = vmatprep.mubr.msk.f32.mxu1 %vm5560_vm11, %v5561_v2  ;;  %5270 = vmatpush3.bf16.msra.mxu1 %v6027_v3 }
0x125c   :  { %5271 = vmatprep.subr.bf16.mxu1 %v5559_v57 }
0x125f   :  { %5273 = vmatpush3.bf16.msra.mxu1 %v6039_v22 }
0x132d   :  { %v4928_v49 = vpop.f32.mrb[26].mxu1 }
0x132e   :  { %v2520_v11 = vadd.f32 %v4928_v49, %v4416_v48  ;;  %v2504_v51 = vpop.f32.mrb[27].mxu1 }
0x132f   :  { %v2519_v53 = vadd.f32 %v4416_v48, %v2504_v51 }
0x1330   :  { %2537 = vrot.lane.b32.xlu0 %v2520_v11, %s5555_s5  ;;  %v4418_v24 = vmul.f32 -1.442695, %v2520_v11 }
0x1331   :  { %2535 = vrot.lane.b32.xlu1 %v2519_v53, %s5555_s5  ;;  %v4417_v54 = vmul.f32 -1.442695, %v2519_v53 }
0x1332   :  { %5457 = vpow2.f32 %v4418_v24 }
0x1333   :  { %5459 = vpow2.f32 %v4417_v54 }
0x133c   :  { %v5458_v55 = vpop.eup %5457 }
0x133d   :  { %v5460_v25 = vpop.eup %5459  ;;  %v2528_v56 = vadd.f32 1.0, %v5458_v55 }
0x133e   :  { %v2527_v26 = vadd.f32 1.0, %v5460_v25  ;;  %v6089_v25 = vld [vmem:[%s6301_s12] sm:$0xff] }
0x133f   :  { %5461 = vrcp.f32 %v2528_v56  ;;  %vm3071_vm2 = vcmp.gt.f32.partialorder %v6089_v25, 0.0 }
0x1340   :  { %5463 = vrcp.f32 %v2527_v26  ;;  %v6096_v26 = vld [vmem:[%s6301_s12 + $0x8] sm:$0xff] }
0x1341   :  { %vm3072_vm1 = vcmp.gt.f32.partialorder %v6096_v26, 0.0 }
0x1349   :  { %v5462_v36 = vpop.eup %5461 }
0x134a   :  { %v5464_v59 = vpop.eup %5463  ;;  %v2556_v4 = vsub.f32 1.0, %v5462_v36  ;;  %v2568_v7 = vmul.f32 %v5462_v36, %v1565_v19 }
0x134b   :  { %v2555_v6 = vsub.f32 1.0, %v5464_v59  ;;  %v2567_v14 = vmul.f32 %v5464_v59, %v1564_v15  ;;  %v6045_v15 = vld [vmem:[%s6299_s30] sm:$0x3] }
0x13a2   :  { %v2538_v58 = vpop.permute.xlu0 %2537 }
0x13a3   :  { %v2542_v60 = vmul.f32 %v5462_v36, %v2538_v58  ;;  %v2536_v61 = vpop.permute.xlu1 %2535 }
0x13a4   :  { %v2541_v62 = vmul.f32 %v5464_v59, %v2536_v61 }
0x13a5   :  { %2547 = vrot.lane.b32.xlu0 %v2542_v60, %s5556_s13 }
0x13a6   :  { %2545 = vrot.lane.b32.xlu1 %v2541_v62, %s5556_s13 }
0x1417   :  { %v2548_v44 = vpop.permute.xlu0 %2547 }
0x1418   :  { %v2552_v50 = vadd.f32 %v2548_v44, %v2520_v11  ;;  %v2546_v20 = vpop.permute.xlu1 %2545 }
0x1419   :  { %v2551_v21 = vadd.f32 %v2546_v20, %v2519_v53 }
0x141a   :  { %5465 = vtanh.f32 %v2552_v50 }
0x141b   :  { %5467 = vtanh.f32 %v2551_v21 }
0x1424   :  { %v5466_v52 = vpop.eup %5465 }
0x1425   :  { %v5468_v63 = vpop.eup %5467  ;;  %2561 = vrot.lane.b32.xlu0 %v5466_v52, %s5557_s21 }
0x1426   :  { %2559 = vrot.lane.b32.xlu1 %v5468_v63, %s5557_s21 }
0x1497   :  { %v2562_v5 = vpop.permute.xlu0 %2561 }
0x1498   :  { %v2566_v8 = vmul.f32 %v2562_v5, %v2556_v4  ;;  %v2560_v9 = vpop.permute.xlu1 %2559 }
0x1499   :  { %v2565_v16 = vmul.f32 %v2560_v9, %v2555_v6 }
0x149a   :  { %v2570_v23 = vadd.f32 %v2568_v7, %v2566_v8 }
0x149b   :  { %v2569_v27 = vadd.f32 %v2567_v14, %v2565_v16 }
0x149c   :  { %v2572_v28 = vmax.f32 %v2570_v23, 0.0 }
0x149d   :  { %v2571_v17 = vmax.f32 %v2569_v27, 0.0 }
0x149e   :  { %2577 = vrot.lane.b32.xlu0 %v2572_v28, %s5557_s21 }
0x149f   :  { %2575 = vrot.lane.b32.xlu1 %v2571_v17, %s5557_s21 }
0x14a2   :  { %5401 = vrot.lane.b32.xlu0 %v5400_v33, %s5558_s8 }
0x14a3   :  { %5396 = vrot.lane.b32.xlu1 %v5395_v46, %s5558_s8 }
0x1510   :  { %v2578_v19 = vpop.permute.xlu0 %2577 }
0x1511   :  { %v2576_v29 = vpop.permute.xlu1 %2575 }
0x1512   :  { %v5250_v10 = vpack.c.bf16 %v2578_v19, %v2576_v29 }
0x1514   :  { %5251 = vmatpush3.bf16.msra.mxu0 %v5250_v10  ;;  %v5402_v40 = vpop.permute.xlu0 %5401 }
0x1515   :  { %5253 = vmatprep.subr.bf16.mxu0 %v6027_v3  ;;  %v5397_v37 = vpop.permute.xlu1 %5396  ;;  %v5404_v48 = vunpack.i.h.bf16 %v5402_v40  ;;  %v5403_v49 = vunpack.i.l.bf16 %v5402_v40 }
0x1516   :  { %v5399_v38 = vunpack.i.h.bf16 %v5397_v37  ;;  %v5398_v39 = vunpack.i.l.bf16 %v5397_v37  ;;  %v206_v37 = vld [vmem:[%s6302_s20 + $0x38] sm:$0xff] }
0x1517   :  { %4934 = vmatmul.mubr.msk.f32.vlgmr.msra.gmra.mrb[24].mxu0 %vm219_vm0, %v6045_v15  ;;  %v6076_v51 = vpack.c.bf16 %v5404_v48, %v5403_v49 }
0x1518   :  { %5255 = vmatpush3.bf16.msra.mxu0 %v6027_v3  ;;  %4944 = vmatprep.mubr.msk.f32.mxu0 %vm404_vm3, %v2576_v29  ;;  %v6068_v42 = vpack.c.bf16 %v5399_v38, %v5398_v39 }
0x1519   :  { %5257 = vmatprep.subr.bf16.mxu0 %v6039_v22 }
0x151c   :  { %5259 = vmatpush3.bf16.msra.mxu0 %v6039_v22 }
0x151d   :  { %5261 = vmatprep.subr.bf16.mxu0 %v5260_v31 }
0x151f   :  { %4945 = vmatmul.mubr.msk.f32.vlgmr.msra.gmra.mrb[26].mxu0 %vm404_vm3, %v2578_v19 }
0x1520   :  { %5263 = vmatpush3.bf16.msra.mxu0 %v5260_v31 }
0x1521   :  { %5265 = vmatprep.subr.bf16.mxu0 %v5264_v47 }
0x1524   :  { %5267 = vmatpush3.bf16.msra.mxu0 %v5264_v47  ;;  %v204_v47 = vld [vmem:[%s6302_s20 + $0x28] sm:$0xff] }
0x1525   :  { %5274 = vmatprep.subr.bf16.mxu0 %v5559_v57  ;;  %v6126_v33 = vpack.c.bf16 %v204_v47, %v203_v43 }
0x15ea   :  { %v2650_v34 = vpop.f32.mrb[24].mxu0 }
0x15eb   :  { %v6062_v35 = vmax.f32 %v2650_v34, 0.0  ;;  %v4935_v18 = vpop.f32.mrb[25].mxu0 }
0x15ec   :  { %v205_v18 = vld [vmem:[%s6302_s20 + $0x30] sm:$0xff] }
0x15ed   :  { %4967 = vmatmul.mubr.msk.f32.vlgmr.msra.gmra.mrb[28].mxu1 %vm404_vm3, %v6062_v35  ;;  %v6136_v38 = vpack.c.bf16 %v206_v37, %v205_v18 }
0x15ee   :  { %4982 = vmatprep.mubr.msk.f32.mxu1 %vm2977_vm12, %v6089_v25 }
0x15f2   :  { %v6066_v41 = vpop.f32.mrb[26].mxu0 }
0x15f3   :  { %v6070_v11 = vpop.f32.mrb[27].mxu0 }
0x15f4   :  { %4955 = vmatprep.mubr.msk.f32.mxu0 %vm404_vm3, %v6070_v11 }
0x15f5   :  { %4956 = vmatmul.mubr.msk.f32.vlgmr.msra.gmra.mrb[28].mxu0 %vm404_vm3, %v6066_v41 }
0x15f6   :  { %5276 = vmatpush3.bf16.msra.mxu0 %v6068_v42  ;;  %4977 = vmatprep.mubr.msk.f32.mxu0 %vm5560_vm11, %v5561_v2 }
0x15f7   :  { %5277 = vmatprep.subr.bf16.mxu0 %v5559_v57 }
0x15fa   :  { %5279 = vmatpush3.bf16.msra.mxu0 %v6076_v51 }
0x16c0   :  { %v2884_v53 = vpop.f32.mrb[28].mxu1 }
0x16c1   :  { %4978 = vmatmul.mubr.msk.f32.vlgmr.msra.gmra.mrb[30].mxu0 %vm404_vm3, %v2884_v53  ;;  %v4968_v24 = vpop.f32.mrb[29].mxu1 }
0x16c2   :  { %4994 = vmatprep.mubr.msk.f32.mxu0 %vm2977_vm12, %v6089_v25 }
0x16c8   :  { %v6084_v54 = vpop.f32.mrb[28].mxu0 }
0x16c9   :  { %v6086_v55 = vpop.f32.mrb[29].mxu0 }
0x1794   :  { %v2973_v56 = vpop.f32.mrb[30].mxu0 }
0x1795   :  { %4980 = vmatprep.subr.msk.mxu1 %vm2984_vm13, %v2973_v56  ;;  %v4979_v36 = vpop.f32.mrb[31].mxu0 }
0x1796   :  { %4981 = vmatpush3.msk.msra.mxu1 %vm2984_vm13, %v2973_v56 }
0x1797   :  { %4983 = vmatmul.mubr.msk.f32.vlgmr.msra.gmra.mrb[30].mxu1 %vm2977_vm12, %v6096_v26  ;;  %5280 = vmatprep.subr.bf16.mxu1 %v5559_v57 }
0x1798   :  { %4989 = vmatprep.mubr.msk.f32.mxu1 %vm5560_vm11, %v5561_v2 }
0x186a   :  { %v4984_v58 = vpop.f32.mrb[30].mxu1 }
0x186b   :  { %v3064_v59 = vadd.f32 %v4984_v58, %v6084_v54  ;;  %v3054_v60 = vpop.f32.mrb[31].mxu1 }
0x186c   :  { %v3063_v61 = vadd.f32 %v3054_v60, %v6086_v55 }
0x186d   :  { %v3068_v62 = vmul.f32 0.01, %v3064_v59  ;;  %vm3066_vm14 = vcmp.gt.f32.partialorder %v3064_v59, 0.0 }
0x186e   :  { %v3067_v44 = vmul.f32 0.01, %v3063_v61  ;;  %vm3065_vm15 = vcmp.gt.f32.partialorder %v3063_v61, 0.0 }
0x186f   :  { %v3070_v50 = vsel %vm3066_vm14, %v3064_v59, %v3068_v62 }
0x1870   :  { %3080 = vperm.xlu0 %5388, %v3070_v50   ;;  %v3069_v20 = vsel %vm3065_vm15, %v3063_v61, %v3067_v44  ;;  %v199_v44 = vld [vmem:[%s6302_s20] sm:$0xff] }
0x1871   :  { %3075 = vperm.xlu1 %5389, %v3069_v20  }
0x18ef   :  { %v3081_v21 = vpop.permute.xlu0 %3080 }
0x18f0   :  { %v3084_v52 = vsel %vm3072_vm1, %v3081_v21, -1e+30  ;;  %v3076_v63 = vpop.permute.xlu1 %3075  ;;  %v201_v21 = vld [vmem:[%s6302_s20 + $0x10] sm:$0xff] }
0x18f1   :  { %v3086_v0 = vsel %vm2977_vm12, %v3084_v52, -inf  ;;  %v3083_v1 = vsel %vm3071_vm2, %v3076_v63, -1e+30  ;;  %v202_v52 = vld [vmem:[%s6302_s20 + $0x18] sm:$0xff] }
0x18f2   :  { %v3085_v4 = vsel %vm2977_vm12, %v3083_v1, -inf  ;;  %v6165_v63 = vpack.c.bf16 %v202_v52, %v201_v21 }
0x18f3   :  { %v3087_v5 = vmax.f32 %v3085_v4, %v3086_v0  ;;  %v6170_v0 = vld [vmem:[%s6303_s7] ss:$0 sm:$0xff] }
0x18f5   :  { %v3088_v6 = vrot.slane %v3087_v5, 4 }
0x18f7   :  { %v3089_v7 = vmax.f32 %v3087_v5, %v3088_v6 }
0x18f9   :  { %v3090_v8 = vrot.slane %v3089_v7, 2 }
0x18fb   :  { %v3091_v9 = vmax.f32 %v3089_v7, %v3090_v8 }
0x18fd   :  { %v3092_v12 = vrot.slane %v3091_v9, 1 }
0x18ff   :  { %v3093_v13 = vmax.f32 %v3091_v9, %v3092_v12 }
0x1901   :  { %v3095_v14 = vmul.f32 %v3093_v13, %v6096_v26  ;;  %v3094_v16 = vmul.f32 %v3093_v13, %v6089_v25  ;;  %v6181_v13 = vld [vmem:[%s5701_s25] ss:$0 sm:$0xff]  ;;  %s5562_s25 = smov [#allocation2]  }
0x1903   :  { %v3099_v23 = vsel %vm2977_vm12, %v3095_v14, 0.0  ;;  %v3096_v27 = vsel %vm2977_vm12, %v3094_v16, 0.0 }
0x1904   :  { %3100 = vadd.xlane.f32.xlu0 %v3099_v23  ;;  %3097 = vadd.xlane.f32.xlu1 %v3096_v27 }
0x1991   :  { %v3101_v28 = vpop.xlane.xlu0 %3100  ;;  %v3098_v17 = vpop.xlane.xlu1 %3097 }
0x1992   :  { %v3103_v19 = vsub.f32 %v3070_v50, %v3101_v28  ;;  %v3102_v29 = vsub.f32 %v3069_v20, %v3098_v17  ;;  %v200_v50 = vld [vmem:[%s6302_s20 + $0x8] sm:$0xff] }
0x1993   :  { %v6159_v20 = vpack.c.bf16 %v200_v50, %v199_v44 }
0x1994   :  { %v3106_v10 = vmul.f32 1.442695, %v3103_v19  ;;  %v3104_v30 = vmul.f32 1.442695, %v3102_v29 }
0x1996   :  { %5469 = vpow2.f32 %v3106_v10 }
0x1997   :  { %5471 = vpow2.f32 %v3104_v30 }
0x19a0   :  { %v5470_v45 = vpop.eup %5469 }
0x19a1   :  { %v5472_v31 = vpop.eup %5471 }
0x19a2   :  { %v5281_v32 = vpack.c.bf16 %v5470_v45, %v5472_v31 }
0x19a4   :  { %5282 = vmatpush3.bf16.msra.mxu1 %v5281_v32 }
0x19a5   :  { %5283 = vmatprep.subr.bf16.mxu1 %v5559_v57 }
0x19a7   :  { %4990 = vmatmul.mubr.msk.f32.vlgmr.msra.gmra.mrb[32].mxu1 %vm219_vm0, %v6045_v15 }
0x19a8   :  { %5001 = vmatprep.mubr.msk.f32.mxu1 %vm5560_vm11, %v5561_v2 }
0x1a7a   :  { %v3174_v46 = vpop.f32.mrb[32].mxu1 }
0x1a7b   :  { %4992 = vmatprep.subr.msk.mxu0 %vm2984_vm13, %v3174_v46  ;;  %v4991_v34 = vpop.f32.mrb[33].mxu1 }
0x1a7c   :  { %4993 = vmatpush3.msk.msra.mxu0 %vm2984_vm13, %v3174_v46 }
0x1a7d   :  { %4995 = vmatmul.mubr.msk.f32.vlgmr.msra.gmra.mrb[32].mxu0 %vm2977_vm12, %v6096_v26  ;;  %5286 = vmatprep.subr.bf16.mxu0 %v5559_v57 }
0x1a7e   :  { %5288 = vmatpush3.bf16.msra.mxu0 %v6126_v33  ;;  %5012 = vmatprep.mubr.msk.f32.mxu0 %vm5560_vm11, %v5561_v2 }
0x1a7f   :  { %5289 = vmatprep.subr.bf16.mxu0 %v5559_v57 }
0x1a82   :  { %5291 = vmatpush3.bf16.msra.mxu0 %v6136_v38 }
0x1a83   :  { %5298 = vmatprep.subr.bf16.mxu0 %v5559_v57 }
0x1a85   :  { %5013 = vmatmul.mubr.msk.f32.vlgmr.msra.gmra.mrb[34].mxu0 %vm404_vm3, %v6062_v35 }
0x1a86   :  { %5300 = vmatpush3.bf16.msra.mxu0 %v6027_v3  ;;  %5034 = vmatprep.mubr.msk.f32.mxu0 %vm5560_vm11, %v5561_v2 }
0x1a87   :  { %5301 = vmatprep.subr.bf16.mxu0 %v5559_v57 }
0x1a8a   :  { %5303 = vmatpush3.bf16.msra.mxu0 %v6039_v22 }
0x1b50   :  { %v4996_v39 = vpop.f32.mrb[32].mxu0 }
0x1b51   :  { %v3253_v40 = vadd.f32 1e-16, %v4996_v39  ;;  %v3247_v48 = vpop.f32.mrb[33].mxu0 }
0x1b52   :  { %v3248_v49 = vadd.f32 1e-16, %v3247_v48 }
0x1b53   :  { %5473 = vrcp.f32 %v3253_v40 }
0x1b54   :  { %5475 = vrcp.f32 %v3248_v49 }
0x1b58   :  { %v3420_v53 = vpop.f32.mrb[34].mxu0 }
0x1b59   :  { %v5014_v24 = vpop.f32.mrb[35].mxu0 }
0x1b5d   :  { %v5474_v56 = vpop.eup %5473 }
0x1b5e   :  { %v5476_v36 = vpop.eup %5475  ;;  %v3259_v3 = vmul.f32 %v5474_v56, %v5470_v45 }
0x1b5f   :  { %v3257_v58 = vmul.f32 %v5476_v36, %v5472_v31 }
0x1b60   :  { %3267 = vperm.xlu1 %5389, %v3259_v3  }
0x1b61   :  { %3262 = vperm.xlu0 %5388, %v3257_v58  }
0x1bdf   :  { %v3268_v59 = vpop.permute.xlu1 %3267 }
0x1be0   :  { %v3271_v22 = vmul.f32 %v6066_v41, %v3268_v59  ;;  %v3263_v60 = vpop.permute.xlu0 %3262 }
0x1be1   :  { %v3270_v61 = vmul.f32 %v3263_v60, %v6070_v11 }
0x1be3   :  { %v5284_v62 = vpack.c.bf16 %v3271_v22, %v3270_v61 }
0x1be5   :  { %5285 = vmatpush3.bf16.msra.mxu1 %v5284_v62 }
0x1be6   :  { %5292 = vmatprep.subr.bf16.mxu1 %v5559_v57 }
0x1be8   :  { %5002 = vmatmul.mubr.msk.f32.vlgmr.msra.gmra.mrb[34].mxu1 %vm219_vm0, %v6045_v15 }
0x1be9   :  { %5023 = vmatprep.mubr.msk.f32.mxu1 %vm5560_vm11, %v5561_v2  ;;  %5294 = vmatpush3.bf16.msra.mxu1 %v6159_v20 }
0x1bea   :  { %5295 = vmatprep.subr.bf16.mxu1 %v5559_v57 }
0x1bed   :  { %5297 = vmatpush3.bf16.msra.mxu1 %v6165_v63 }
0x1bee   :  { %5304 = vmatprep.subr.bf16.mxu1 %v5559_v57 }
0x1cbb   :  { %v3344_v1 = vpop.f32.mrb[34].mxu1 }
0x1cbc   :  { %v3345_v4 = vadd.f32 %v6170_v0, %v3344_v1  ;;  %v5003_v5 = vpop.f32.mrb[35].mxu1 }
0x1cbe   :  { %v3349_v6 = vmin.f32 %v3345_v4, 0.0  ;;  %vm3348_vm4 = vcmp.gt.f32.partialorder %v3345_v4, 0.0 }
0x1cc0   :  { %v3350_v7 = vmul.f32 1.442695, %v3349_v6 }
0x1cc2   :  { %5477 = vpow2.f32 %v3350_v7 }
0x1ccc   :  { %v5478_v8 = vpop.eup %5477 }
0x1ccd   :  { %v4435_v9 = vadd.f32 -1.0, %v5478_v8 }
0x1ccf   :  { %v3353_v12 = vsel %vm3348_vm4, %v3345_v4, %v4435_v9 }
0x1cd0   :  { %5024 = vmatmul.mubr.msk.f32.vlgmr.msra.gmra.mrb[36].mxu1 %vm404_vm3, %v3353_v12 }
0x1cd1   :  { %5306 = vmatpush3.bf16.msra.mxu1 %v6068_v42  ;;  %5045 = vmatprep.mubr.msk.f32.mxu1 %vm5560_vm11, %v5561_v2 }
0x1cd2   :  { %5307 = vmatprep.subr.bf16.mxu1 %v5559_v57 }
0x1cd5   :  { %5309 = vmatpush3.bf16.msra.mxu1 %v6076_v51 }
0x1cd6   :  { %5310 = vmatprep.subr.bf16.mxu1 %v5559_v57 }
0x1da3   :  { %v3493_v14 = vpop.f32.mrb[36].mxu1 }
0x1da4   :  { %v3494_v16 = vadd.f32 %v3493_v14, %v3420_v53  ;;  %v5025_v23 = vpop.f32.mrb[37].mxu1 }
0x1da6   :  { %v3503_v27 = vadd.f32 %v6181_v13, %v3494_v16 }
0x1da8   :  { %3511 = vrot.lane.b32.xlu1 %v3503_v27, %s5555_s5  ;;  %v4439_v28 = vmul.f32 -1.442695, %v3503_v27 }
0x1daa   :  { %5479 = vpow2.f32 %v4439_v28 }
0x1db4   :  { %v5480_v42 = vpop.eup %5479 }
0x1db5   :  { %v3507_v17 = vadd.f32 1.0, %v5480_v42 }
0x1db7   :  { %5481 = vrcp.f32 %v3507_v17 }
0x1dc1   :  { %v5482_v19 = vpop.eup %5481 }
0x1dc2   :  { %v3521_v32 = vsub.f32 1.0, %v5482_v19 }
0x1e1a   :  { %v3512_v29 = vpop.permute.xlu1 %3511 }
0x1e1b   :  { %v3514_v10 = vmul.f32 %v5482_v19, %v3512_v29 }
0x1e1d   :  { %3516 = vrot.lane.b32.xlu0 %v3514_v10, %s5556_s13 }
0x1e21   :  { %3527 = vrot.lane.b32.xlu0 %v6062_v35, %s5555_s5 }
0x1e8f   :  { %v3517_v51 = vpop.permute.xlu0 %3516 }
0x1e90   :  { %v3519_v30 = vadd.f32 %v3517_v51, %v3503_v27 }
0x1e92   :  { %5483 = vtanh.f32 %v3519_v30 }
0x1e93   :  { %v3528_v31 = vpop.permute.xlu0 %3527 }
0x1e94   :  { %v3530_v47 = vmul.f32 %v5482_v19, %v3528_v31 }
0x1e9c   :  { %v5484_v45 = vpop.eup %5483 }
0x1e9d   :  { %3523 = vrot.lane.b32.xlu1 %v5484_v45, %s5557_s21 }
0x1f0f   :  { %v3524_v43 = vpop.permute.xlu1 %3523 }
0x1f10   :  { %v3526_v46 = vmul.f32 %v3524_v43, %v3521_v32 }
0x1f12   :  { %v6189_v34 = vadd.f32 %v3530_v47, %v3526_v46 }
0x1f14   :  { %v3532_v18 = vmax.f32 %v6189_v34, 0.0 }
0x1f16   :  { %3534 = vrot.lane.b32.xlu1 %v3532_v18, %s5557_s21 }
0x1f88   :  { %v6195_v35 = vpop.permute.xlu1 %3534 }
0x1f89   :  { %5035 = vmatmul.mubr.msk.f32.vlgmr.msra.gmra.mrb[36].mxu0 %vm404_vm3, %v6195_v35 }
0x1f8a   :  { %5050 = vmatprep.mubr.msk.f32.mxu0 %vm2977_vm12, %v6089_v25 }
0x205c   :  { %v3604_v37 = vpop.f32.mrb[36].mxu0 }
0x205d   :  { %v5036_v39 = vpop.f32.mrb[37].mxu0  ;;  %5046 = vmatmul.mubr.msk.f32.vlgmr.msra.gmra.mrb[38].mxu1 %vm404_vm3, %v3604_v37 }
0x205e   :  { %5057 = vmatprep.mubr.msk.f32.mxu1 %vm5560_vm11, %v5561_v2 }
0x2130   :  { %v3677_v40 = vpop.f32.mrb[38].mxu1 }
0x2131   :  { %v5047_v48 = vpop.f32.mrb[39].mxu1  ;;  %5048 = vmatprep.subr.msk.mxu0 %vm2984_vm13, %v3677_v40 }
0x2132   :  { %5049 = vmatpush3.msk.msra.mxu0 %vm2984_vm13, %v3677_v40 }
0x2133   :  { %5051 = vmatmul.mubr.msk.f32.vlgmr.msra.gmra.mrb[38].mxu0 %vm2977_vm12, %v6096_v26 }
0x2134   :  { %5062 = vmatprep.mubr.msk.f32.mxu0 %vm2977_vm12, %v6089_v25 }
0x2206   :  { %v5052_v49 = vpop.f32.mrb[38].mxu0 }
0x2207   :  { %v3760_v53 = vadd.f32 %v5052_v49, %v6084_v54  ;;  %v3750_v24 = vpop.f32.mrb[39].mxu0 }
0x2208   :  { %v3759_v56 = vadd.f32 %v3750_v24, %v6086_v55 }
0x2209   :  { %v3764_v36 = vmul.f32 0.01, %v3760_v53  ;;  %vm3762_vm5 = vcmp.gt.f32.partialorder %v3760_v53, 0.0 }
0x220a   :  { %v3763_v3 = vmul.f32 0.01, %v3759_v56  ;;  %vm3761_vm6 = vcmp.gt.f32.partialorder %v3759_v56, 0.0 }
0x220b   :  { %v3766_v58 = vsel %vm3762_vm5, %v3760_v53, %v3764_v36 }
0x220c   :  { %3774 = vperm.xlu1 %5389, %v3766_v58   ;;  %v3765_v59 = vsel %vm3761_vm6, %v3759_v56, %v3763_v3 }
0x220d   :  { %3769 = vperm.xlu0 %5388, %v3765_v59  }
0x228b   :  { %v3775_v22 = vpop.permute.xlu1 %3774 }
0x228c   :  { %v3778_v60 = vsel %vm3072_vm1, %v3775_v22, -1e+30  ;;  %v3770_v61 = vpop.permute.xlu0 %3769 }
0x228d   :  { %v3780_v62 = vsel %vm2977_vm12, %v3778_v60, -inf  ;;  %v3777_v54 = vsel %vm3071_vm2, %v3770_v61, -1e+30 }
0x228e   :  { %v3779_v55 = vsel %vm2977_vm12, %v3777_v54, -inf  ;;  %v209_v54 = vld [vmem:[%s5706_s29 + $0x8] sm:$0xff] }
0x228f   :  { %v3781_v44 = vmax.f32 %v3779_v55, %v3780_v62  ;;  %v208_v62 = vld [vmem:[%s5706_s29] sm:$0xff] }
0x2290   :  { %v5329_v55 = vpack.c.bf16 %v209_v54, %v208_v62 }
0x2291   :  { %v3782_v50 = vrot.slane %v3781_v44, 4 }
0x2293   :  { %v3783_v21 = vmax.f32 %v3781_v44, %v3782_v50  ;;  %v211_v44 = vld [vmem:[%s5706_s29 + $0x18] sm:$0xff] }
0x2295   :  { %v3784_v52 = vrot.slane %v3783_v21, 2 }
0x2297   :  { %v3785_v1 = vmax.f32 %v3783_v21, %v3784_v52 }
0x2299   :  { %v3786_v4 = vrot.slane %v3785_v1, 1 }
0x229b   :  { %v3787_v5 = vmax.f32 %v3785_v1, %v3786_v4 }
0x229d   :  { %v3789_v6 = vmul.f32 %v3787_v5, %v6096_v26  ;;  %v3788_v7 = vmul.f32 %v3787_v5, %v6089_v25 }
0x229f   :  { %v3793_v8 = vsel %vm2977_vm12, %v3789_v6, 0.0  ;;  %v3790_v9 = vsel %vm2977_vm12, %v3788_v7, 0.0 }
0x22a0   :  { %3794 = vadd.xlane.f32.xlu1 %v3793_v8  ;;  %3791 = vadd.xlane.f32.xlu0 %v3790_v9  ;;  %v4454_v9 = vld [vmem:[%s5711_s27] ss:$0 sm:$0xff] }
0x232d   :  { %v3795_v12 = vpop.xlane.xlu1 %3794  ;;  %v3792_v14 = vpop.xlane.xlu0 %3791 }
0x232e   :  { %v3797_v16 = vsub.f32 %v3766_v58, %v3795_v12  ;;  %v3796_v23 = vsub.f32 %v3765_v59, %v3792_v14 }
0x2330   :  { %v3800_v27 = vmul.f32 1.442695, %v3797_v16  ;;  %v3798_v28 = vmul.f32 1.442695, %v3796_v23 }
0x2332   :  { %5485 = vpow2.f32 %v3800_v27 }
0x2333   :  { %5487 = vpow2.f32 %v3798_v28 }
0x233c   :  { %v5486_v42 = vpop.eup %5485 }
0x233d   :  { %v5488_v17 = vpop.eup %5487 }
0x233e   :  { %v5311_v19 = vpack.c.bf16 %v5486_v42, %v5488_v17 }
0x2340   :  { %5312 = vmatpush3.bf16.msra.mxu1 %v5311_v19 }
0x2341   :  { %5313 = vmatprep.subr.bf16.mxu1 %v5559_v57 }
0x2343   :  { %5058 = vmatmul.mubr.msk.f32.vlgmr.msra.gmra.mrb[40].mxu1 %vm219_vm0, %v6045_v15 }
0x2344   :  { %5069 = vmatprep.mubr.msk.f32.mxu1 %vm5560_vm11, %v5561_v2 }
0x2416   :  { %v3868_v25 = vpop.f32.mrb[40].mxu1 }
0x2417   :  { %5060 = vmatprep.subr.msk.mxu0 %vm2984_vm13, %v3868_v25  ;;  %v5059_v29 = vpop.f32.mrb[41].mxu1 }
0x2418   :  { %5061 = vmatpush3.msk.msra.mxu0 %vm2984_vm13, %v3868_v25 }
0x2419   :  { %5063 = vmatmul.mubr.msk.f32.vlgmr.msra.gmra.mrb[40].mxu0 %vm2977_vm12, %v6096_v26  ;;  %5316 = vmatprep.subr.bf16.mxu0 %v5559_v57 }
0x241a   :  { %5318 = vmatpush3.bf16.msra.mxu0 %v6126_v33  ;;  %5080 = vmatprep.mubr.msk.f32.mxu0 %vm5560_vm11, %v5561_v2 }
0x241b   :  { %5319 = vmatprep.subr.bf16.mxu0 %v5559_v57 }
0x241e   :  { %5321 = vmatpush3.bf16.msra.mxu0 %v6136_v38 }
0x241f   :  { %5328 = vmatprep.subr.bf16.mxu0 %v5559_v57 }
0x2421   :  { %5081 = vmatmul.mubr.msk.f32.vlgmr.msra.gmra.mrb[42].mxu0 %vm404_vm3, %v6195_v35 }
0x2422   :  { %5102 = vmatprep.mubr.msk.f32.mxu0 %vm5560_vm11, %v5561_v2  ;;  %5330 = vmatpush3.bf16.msra.mxu0 %v5329_v55 }
0x2423   :  { %5331 = vmatprep.subr.bf16.mxu0 %v5559_v57 }
0x24ec   :  { %v5064_v26 = vpop.f32.mrb[40].mxu0 }
0x24ed   :  { %v3947_v10 = vadd.f32 1e-16, %v5064_v26  ;;  %v3941_v51 = vpop.f32.mrb[41].mxu0 }
0x24ee   :  { %v3942_v30 = vadd.f32 1e-16, %v3941_v51 }
0x24ef   :  { %5489 = vrcp.f32 %v3947_v10 }
0x24f0   :  { %5491 = vrcp.f32 %v3942_v30 }
0x24f4   :  { %v4108_v33 = vpop.f32.mrb[42].mxu0 }
0x24f5   :  { %v5082_v45 = vpop.f32.mrb[43].mxu0 }
0x24f9   :  { %v5490_v31 = vpop.eup %5489 }
0x24fa   :  { %v5492_v32 = vpop.eup %5491  ;;  %v3953_v43 = vmul.f32 %v5490_v31, %v5486_v42 }
0x24fb   :  { %v3951_v38 = vmul.f32 %v5492_v32, %v5488_v17 }
0x24fc   :  { %3961 = vperm.xlu1 %5389, %v3953_v43  }
0x24fd   :  { %3956 = vperm.xlu0 %5388, %v3951_v38  }
0x257b   :  { %v3962_v47 = vpop.permute.xlu1 %3961 }
0x257c   :  { %v3965_v46 = vmul.f32 %v6066_v41, %v3962_v47  ;;  %v3957_v35 = vpop.permute.xlu0 %3956 }
0x257d   :  { %v3964_v37 = vmul.f32 %v3957_v35, %v6070_v11 }
0x257f   :  { %v5314_v39 = vpack.c.bf16 %v3965_v46, %v3964_v37 }
0x2581   :  { %5315 = vmatpush3.bf16.msra.mxu1 %v5314_v39 }
0x2582   :  { %5322 = vmatprep.subr.bf16.mxu1 %v5559_v57 }
0x2584   :  { %5070 = vmatmul.mubr.msk.f32.vlgmr.msra.gmra.mrb[42].mxu1 %vm219_vm0, %v6045_v15  ;;  %vm4293_vm0 = vcmask 58368  }
0x2585   :  { %5324 = vmatpush3.bf16.msra.mxu1 %v6159_v20  ;;  %5091 = vmatprep.mubr.msk.f32.mxu1 %vm5560_vm11, %v5561_v2 }
0x2586   :  { %5325 = vmatprep.subr.bf16.mxu1 %v5559_v57 }
0x2589   :  { %5327 = vmatpush3.bf16.msra.mxu1 %v6165_v63 }
0x2657   :  { %v4032_v41 = vpop.f32.mrb[42].mxu1 }
0x2658   :  { %v4033_v40 = vadd.f32 %v6170_v0, %v4032_v41  ;;  %v5071_v11 = vpop.f32.mrb[43].mxu1 }
0x265a   :  { %v4037_v48 = vmin.f32 %v4033_v40, 0.0  ;;  %vm4036_vm7 = vcmp.gt.f32.partialorder %v4033_v40, 0.0 }
0x265c   :  { %v4038_v49 = vmul.f32 1.442695, %v4037_v48 }
0x265e   :  { %5493 = vpow2.f32 %v4038_v49 }
0x2668   :  { %v5494_v53 = vpop.eup %5493 }
0x2669   :  { %v4450_v24 = vadd.f32 -1.0, %v5494_v53 }
0x266b   :  { %v4041_v15 = vsel %vm4036_vm7, %v4033_v40, %v4450_v24 }
0x266c   :  { %5092 = vmatmul.mubr.msk.f32.vlgmr.msra.gmra.mrb[44].mxu1 %vm404_vm3, %v4041_v15 }
0x273f   :  { %v4181_v20 = vpop.f32.mrb[44].mxu1 }
0x2740   :  { %v4182_v56 = vadd.f32 %v4181_v20, %v4108_v33  ;;  %v5093_v2 = vpop.f32.mrb[45].mxu1 }
0x2742   :  { %v4185_v63 = vadd.f32 %v6181_v13, %v4182_v56  ;;  %v210_v13 = vld [vmem:[%s5706_s29 + $0x10] sm:$0xff]  ;;  %s4301_s29 = sshll.u32 %s5562_s25, 4  ;;  %s4302_s29 = int_to_ptr.vmem [resolvable:$true] %s4301_s29 }
0x2743   :  { %v5332_v50 = vpack.c.bf16 %v211_v44, %v210_v13  ;;  %s5501_s10 = scalar_lea.vmem %s4302_s29, 32  ;;  %p5506_p1 = scmp.lt.s32.totalorder %s4302_s29, %s4302_s29 }
0x2744   :  { %4193 = vrot.lane.b32.xlu0 %v4185_v63, %s5555_s5  ;;  %v4453_v0 = vmul.f32 -1.442695, %v4185_v63  ;;  %p5502_p0 = scmp.ne.s32.totalorder %s4302_s29, %s5501_s10  ;;  %p5507_p2 = scmp.lt.s32.totalorder %s5501_s10, %s5501_s10 }
0x2745   :  { %5333 = vmatpush3.bf16.msra.mxu0 %v5332_v50 }
0x2746   :  { %5495 = vpow2.f32 %v4453_v0  ;;  %p5508_p3 = por %p5507_p2, %p5506_p1 }
0x2748   :  { %p5509_p4 = pnand %p5508_p3, %p5502_p0 }
0x2750   :  { %v5496_v36 = vpop.eup %5495 }
0x2751   :  { %v4189_v3 = vadd.f32 1.0, %v5496_v36 }
0x2753   :  { %5497 = vrcp.f32 %v4189_v3 }
0x275d   :  { %v5498_v58 = vpop.eup %5497 }
0x275e   :  { %v4203_v52 = vsub.f32 1.0, %v5498_v58  ;;  %v4209_v4 = vmul.f32 %v5498_v58, %v3532_v18 }
0x27b6   :  { %v4194_v59 = vpop.permute.xlu0 %4193 }
0x27b7   :  { %v4196_v22 = vmul.f32 %v5498_v58, %v4194_v59 }
0x27b9   :  { %4198 = vrot.lane.b32.xlu1 %v4196_v22, %s5556_s13 }
0x282b   :  { %v4199_v60 = vpop.permute.xlu1 %4198 }
0x282c   :  { %v4201_v61 = vadd.f32 %v4199_v60, %v4185_v63 }
0x282e   :  { %5499 = vtanh.f32 %v4201_v61 }
0x2838   :  { %v5500_v21 = vpop.eup %5499 }
0x2839   :  { %4205 = vrot.lane.b32.xlu0 %v5500_v21, %s5557_s21 }
0x28ab   :  { %v4206_v1 = vpop.permute.xlu0 %4205 }
0x28ac   :  { %v4208_v5 = vmul.f32 %v4206_v1, %v4203_v52 }
0x28ae   :  { %v4210_v6 = vadd.f32 %v4209_v4, %v4208_v5 }
0x28b0   :  { %v4211_v7 = vmax.f32 %v4210_v6, 0.0 }
0x28b2   :  { %4219 = vrot.lane.b32.xlu1 %v4211_v7, %s5557_s21 }
0x2924   :  { %v4220_v8 = vpop.permute.xlu1 %4219 }
0x2925   :  { %5103 = vmatmul.mubr.msk.f32.vlgmr.msra.gmra.mrb[44].mxu0 %vm404_vm3, %v4220_v8 }
0x29f8   :  { %v4289_v57 = vpop.f32.mrb[44].mxu0 }
0x29f9   :  { %v4290_v12 = vadd.f32 %v4454_v9, %v4289_v57  ;;  %v5104_v14 = vpop.f32.mrb[45].mxu0 }
0x29fb   :  { %4294 = vst.msk [vmem:[#allocation2] sm:$0x3] %vm4293_vm0, %v4290_v12 }
0x29fc   :  { %5512 = shalt.err (!%p5509_p4)
}
0x29fd   :  { %s5513_s11 = scalar_lea.hbm %s5716_s4, 32 }
0x29fe   :  { %p5514_p5 = scmp.ne.s32.totalorder %s5716_s4, %s5513_s11  ;;  %p5517_p6 = scmp.lt.u32.totalorder %s5513_s11, %s5716_s4 }
0x2a00   :  { %p5519_p7 = pnand %p5517_p6, %p5514_p5 }
0x2a02   :  { %5522 = shalt.err (!%p5519_p7)
}
0x2a03   :  { %4304 = dma.vmem_to_hbm [thread:$0]  %s4302_s29, 32, %s5716_s4, [#allocation3]  }
0x2a04   :  { %5523 = dma.done.wait [#allocation3], 32  }
0x2a05   :  { %5524 = vsyncadd [#allocation3], 4294967264 }
0x2a06   :  { %4308 = vsyncpa [#allocation3], 1 }

</bundles_post_ra>
